<compile_context>
chip_gen: v7x
topology: tpu7x:2x2x1
jax: 0.10.0
libtpu: 0.0.40
codegen_flags: <defaults>
</compile_context>

<pallas_src>
import functools

import jax
import jax.numpy as jnp
from jax.experimental import pallas as pl
from jax.experimental.pallas import tpu as pltpu


def encoder_kernel(x_ref, mask_add_ref, keep_ref,
                   wqkv_ref, wo_ref, g1_ref, b1_ref,
                   w1_ref, bff1_ref, w2_ref, bff2_ref, g2_ref, b2_ref,
                   out_ref, att_ref, *, batch, seq, head_count):
    layer = pl.program_id(0)

    # First grid step: load the input activation into the resident output block (the carry).
    @pl.when(layer == 0)
    def _():
        out_ref[...] = x_ref[...]

    h = out_ref[...]                                   # (M, D) f32 activation, M = N*L
    M, D = h.shape
    dh = D // head_count

    # --- fused QKV projection: one bf16 MXU matmul, f32 accumulation.
    # 1/sqrt(dh) is pre-folded into the Q columns of Wqkv.
    qkv = jnp.dot(h.astype(jnp.bfloat16), wqkv_ref[...],
                  preferred_element_type=jnp.float32)  # (M, 3D) f32
    qkv3 = qkv.reshape(batch, seq, 3 * D)              # split leading dim only (lane dim kept)
    mask_add = mask_add_ref[...]                       # (N, 1, L): 0 or -1e9 on masked keys

    # --- multi-head scaled dot-product self-attention (heads statically unrolled) ---
    for hd in range(head_count):
        Qh = qkv3[:, :, hd * dh:(hd + 1) * dh].astype(jnp.bfloat16)
        Kh = qkv3[:, :, D + hd * dh:D + (hd + 1) * dh].astype(jnp.bfloat16)
        Vh = qkv3[:, :, 2 * D + hd * dh:2 * D + (hd + 1) * dh].astype(jnp.bfloat16)
        s = jnp.einsum('nqd,nkd->nqk', Qh, Kh,
                       preferred_element_type=jnp.float32)      # (N, L, L) f32
        s = s + mask_add                               # mask keys
        s = s - jnp.max(s, axis=-1, keepdims=True)     # stable softmax
        p = jnp.exp(s)
        p = p * pl.reciprocal(jnp.sum(p, axis=-1, keepdims=True), approx=True)
        # Write this head's output directly into the VMEM scratch slab (bounds live ranges,
        # no lane-concatenate at the end of the head loop).
        att_ref[:, :, hd * dh:(hd + 1) * dh] = jnp.einsum(
            'nqk,nkd->nqd', p.astype(jnp.bfloat16), Vh,
            preferred_element_type=jnp.float32)

    # Single output projection over the concatenated heads (bf16 MXU, f32 acc).
    att = jnp.dot(att_ref[...].reshape(M, D).astype(jnp.bfloat16), wo_ref[...],
                  preferred_element_type=jnp.float32)

    eps = 1e-5
    inv_m = 1.0 / float(M)

    def batchnorm(y, gamma, beta):
        # nn.BatchNorm1d on (N, C, L), training mode: biased stats over N*L rows per channel.
        # Single-traversal stats: var = E[y^2] - mean^2 (f32 accumulation; clamped >= 0 to
        # guard the rare tiny-negative from cancellation).
        mean = jnp.sum(y, axis=0, keepdims=True) * inv_m
        var = jnp.sum(y * y, axis=0, keepdims=True) * inv_m - mean * mean
        var = jnp.maximum(var, 0.0)
        return (y - mean) * jax.lax.rsqrt(var + eps) * gamma + beta

    # residual + BN1
    h1 = batchnorm(h + att, g1_ref[...], b1_ref[...])

    # feed-forward (bf16 MXU matmuls, f32 accumulation, f32 biases)
    ff = jnp.dot(h1.astype(jnp.bfloat16), w1_ref[...],
                 preferred_element_type=jnp.float32) + bff1_ref[...]
    ff = jnp.maximum(ff, 0.0)
    ff = jnp.dot(ff.astype(jnp.bfloat16), w2_ref[...],
                 preferred_element_type=jnp.float32) + bff2_ref[...]

    # residual + BN2, then h_out[mask] = 0
    h2 = batchnorm(h1 + ff, g2_ref[...], b2_ref[...])
    out_ref[...] = h2 * keep_ref[...]                  # (M, 1) broadcast over channels


def init_stacked_params(key, layer_count, head_count, model_size, ff_size):
    """Per-layer params stacked along a leading layer axis (for the layer-fused grid).

    Matmul weights are stored bf16 (MXU-native); biases / BN affine params stay f32.
    The attention scale 1/sqrt(dh) is folded into the Q columns of the fused QKV weight.
    """
    D, F = model_size, ff_size
    dh = D // head_count
    scale = 1.0 / (float(dh) ** 0.5)

    def lin(k, fan_in, shape):
        bound = 1.0 / (fan_in ** 0.5)
        return jax.random.uniform(k, shape, jnp.float32, -bound, bound)

    per_layer = []
    for k in jax.random.split(key, layer_count):
        ks = jax.random.split(k, 8)
        Wq = lin(ks[0], D, (D, D)) * scale             # fold 1/sqrt(dh) into Q projection
        Wk = lin(ks[1], D, (D, D))
        Wv = lin(ks[2], D, (D, D))
        Wqkv = jnp.concatenate([Wq, Wk, Wv], axis=1).astype(jnp.bfloat16)   # (D, 3D) bf16
        Wo = lin(ks[3], D, (D, D)).astype(jnp.bfloat16)
        g1 = jnp.ones((1, D), jnp.float32)
        b1 = jnp.zeros((1, D), jnp.float32)
        W1 = lin(ks[4], D, (D, F)).astype(jnp.bfloat16)
        bff1 = lin(ks[5], D, (1, F))
        W2 = lin(ks[6], F, (F, D)).astype(jnp.bfloat16)
        bff2 = lin(ks[7], F, (1, D))
        g2 = jnp.ones((1, D), jnp.float32)
        b2 = jnp.zeros((1, D), jnp.float32)
        per_layer.append((Wqkv, Wo, g1, b1, W1, bff1, W2, bff2, g2, b2))
    return tuple(jnp.stack(t) for t in zip(*per_layer))


def transformer_encoder(x, mask, stacked_params, *, head_count):
    """x: (N, L, D) f32, mask: (N, L) bool (True == masked). One pallas_call for all layers."""
    N, L, D = x.shape
    M = N * L
    Wqkv, Wo, g1, b1, W1, bff1, W2, bff2, g2, b2 = stacked_params
    layer_count = Wqkv.shape[0]
    F = W1.shape[-1]

    # Layout plumbing in the wrapper (free XLA work): flat activation + precomputed masks.
    x2 = x.reshape(M, D)
    mask_f = mask.astype(jnp.float32)
    mask_add = (mask_f * -1e9).reshape(N, 1, L)        # additive key mask for scores
    keep = (1.0 - mask_f).reshape(M, 1)                # multiplicative output mask

    def full(shape):                                    # same block every layer (no re-DMA)
        return pl.BlockSpec(shape, lambda l, _s=shape: (0,) * len(_s))

    def per_layer(shape):                               # leading layer axis, squeezed in-kernel
        return pl.BlockSpec((None,) + shape, lambda l, _s=shape: (l,) + (0,) * len(_s))

    kernel = functools.partial(encoder_kernel, batch=N, seq=L, head_count=head_count)

    # Size the scoped VMEM limit from the actual footprint (with headroom) rather than the
    # default (16 MiB on v5e / 32 MiB on v6e-v7x); capped under v7x's 64 MiB physical VMEM.
    weight_bytes = 2 * (D * 3 * D + D * D + D * F + F * D)        # bf16 per-layer matmuls
    small_bytes = 4 * (4 * D + F + 128)                            # f32 biases / BN params (padded-ish)
    act_bytes = 4 * (3 * M * D + M * 128) + 4 * N * 8 * 128       # x / out / scratch / keep / mask
    inter_bytes = 4 * M * (3 * D + F) + 4 * N * L * L * head_count
    est = 2 * 2 * (weight_bytes + small_bytes) + 2 * act_bytes + inter_bytes
    vmem_limit = int(min(max(4 * est, 16 * 1024 * 1024), 64 * 1024 * 1024))

    out2 = pl.pallas_call(
        kernel,
        out_shape=jax.ShapeDtypeStruct((M, D), jnp.float32),
        grid=(layer_count,),
        in_specs=[full((M, D)), full((N, 1, L)), full((M, 1)),
                  per_layer((D, 3 * D)), per_layer((D, D)),
                  per_layer((1, D)), per_layer((1, D)),
                  per_layer((D, F)), per_layer((1, F)),
                  per_layer((F, D)), per_layer((1, D)),
                  per_layer((1, D)), per_layer((1, D))],
        # Output block index is constant across the grid -> stays resident in VMEM and acts
        # as the layer-to-layer activation carry; written back to HBM only at the end.
        out_specs=pl.BlockSpec((M, D), lambda l: (0, 0)),
        scratch_shapes=[pltpu.VMEM((N, L, D), jnp.float32)],      # per-head output slab
        compiler_params=pltpu.CompilerParams(
            dimension_semantics=("arbitrary",),        # output revisited across layers
            vmem_limit_bytes=vmem_limit),
    )(x2, mask_add, keep, Wqkv, Wo, g1, b1, W1, bff1, W2, bff2, g2, b2)

    # TODO(synk): at realistic sizes (large N*L) add an M-tile pipeline axis (flash-style
    # attention + two-pass accumulator BatchNorm) and mark it "parallel" so v7x's second
    # TensorCore is used; at the demo shapes everything fits trivially in VMEM.
    return out2.reshape(N, L, D)


if __name__ == "__main__":
    LAYER_COUNT = 2
    HEAD_COUNT = 4
    MODEL_SIZE = 32
    FF_SIZE = 64
    N, L = 2, 8

    key = jax.random.PRNGKey(0)
    kx, kp = jax.random.split(key)

    x = jax.random.normal(kx, (N, L, MODEL_SIZE), jnp.float32)
    mask = jnp.zeros((N, L), jnp.bool_)
    mask = mask.at[0, L - 1].set(True)
    mask = mask.at[1, L - 2].set(True)
    mask = mask.at[1, L - 1].set(True)

    params = init_stacked_params(kp, LAYER_COUNT, HEAD_COUNT, MODEL_SIZE, FF_SIZE)

    encode = jax.jit(functools.partial(transformer_encoder, head_count=HEAD_COUNT))
    out = encode(x, mask, params)
    out = jax.block_until_ready(out)

    assert out.shape == (N, L, MODEL_SIZE)
    assert bool(jnp.all(jnp.isfinite(out)))
    # masked positions must be exactly zero
    assert bool(jnp.all(jnp.where(mask[:, :, None], out == 0.0, True)))
    print("KERNEL_OK")
</pallas_src>

<mosaic_0001>
module attributes {stable_mosaic.version = 11 : i64} {
  func.func @encoder_kernel(%arg0: i32, %arg1: memref<16x32xf32, #tpu.memory_space<vmem>>, %arg2: memref<2x1x8xf32, #tpu.memory_space<vmem>>, %arg3: memref<16x1xf32, #tpu.memory_space<vmem>>, %arg4: memref<1x32x96xbf16, #tpu.memory_space<vmem>>, %arg5: memref<1x32x32xbf16, #tpu.memory_space<vmem>>, %arg6: memref<1x1x32xf32, #tpu.memory_space<vmem>>, %arg7: memref<1x1x32xf32, #tpu.memory_space<vmem>>, %arg8: memref<1x32x64xbf16, #tpu.memory_space<vmem>>, %arg9: memref<1x1x64xf32, #tpu.memory_space<vmem>>, %arg10: memref<1x64x32xbf16, #tpu.memory_space<vmem>>, %arg11: memref<1x1x32xf32, #tpu.memory_space<vmem>>, %arg12: memref<1x1x32xf32, #tpu.memory_space<vmem>>, %arg13: memref<1x1x32xf32, #tpu.memory_space<vmem>>, %arg14: memref<16x32xf32, #tpu.memory_space<vmem>>, %arg15: memref<2x8x32xf32, #tpu.memory_space<vmem>>) attributes {dimension_semantics = [#tpu.dimension_semantics<arbitrary>], iteration_bounds = array<i64: 2>, scalar_prefetch = 0 : i64, scratch_operands = 1 : i64, tpu.core_type = #tpu.core_type<tc>, window_params = [{pipeline_mode = #tpu.pipeline_mode<synchronous>, transform_indices = @transform_0, window_bounds = array<i64: 16, 32>}, {pipeline_mode = #tpu.pipeline_mode<synchronous>, transform_indices = @transform_1, window_bounds = array<i64: 2, 1, 8>}, {pipeline_mode = #tpu.pipeline_mode<synchronous>, transform_indices = @transform_2, window_bounds = array<i64: 16, 1>}, {transform_indices = @transform_3, window_bounds = array<i64: 1, 32, 96>}, {transform_indices = @transform_4, window_bounds = array<i64: 1, 32, 32>}, {transform_indices = @transform_5, window_bounds = array<i64: 1, 1, 32>}, {transform_indices = @transform_6, window_bounds = array<i64: 1, 1, 32>}, {transform_indices = @transform_7, window_bounds = array<i64: 1, 32, 64>}, {transform_indices = @transform_8, window_bounds = array<i64: 1, 1, 64>}, {transform_indices = @transform_9, window_bounds = array<i64: 1, 64, 32>}, {transform_indices = @transform_10, window_bounds = array<i64: 1, 1, 32>}, {transform_indices = @transform_11, window_bounds = array<i64: 1, 1, 32>}, {transform_indices = @transform_12, window_bounds = array<i64: 1, 1, 32>}, {pipeline_mode = #tpu.pipeline_mode<synchronous>, transform_indices = @transform_13, window_bounds = array<i64: 16, 32>}]} {
    %c0_i32 = arith.constant 0 : i32
    %0 = arith.cmpi eq, %arg0, %c0_i32 : i32
    %1 = arith.extui %0 : i1 to i32
    %c0_i32_0 = arith.constant 0 : i32
    %2 = arith.cmpi ne, %1, %c0_i32_0 : i32
    scf.if %2 {
      %c0_83 = arith.constant 0 : index
      %c0_84 = arith.constant 0 : index
      %184 = vector.load %arg1[%c0_83, %c0_84] : memref<16x32xf32, #tpu.memory_space<vmem>>, vector<16x32xf32>
      %c0_85 = arith.constant 0 : index
      %c0_86 = arith.constant 0 : index
      %185 = vector.load %arg14[%c0_85, %c0_86] : memref<16x32xf32, #tpu.memory_space<vmem>>, vector<16x32xf32>
      tpu.vector_store %arg14[%c0_85, %c0_86], %184 {strides = array<i32>} : memref<16x32xf32, #tpu.memory_space<vmem>>, vector<16x32xf32>,
    } else {
    }
    %c0 = arith.constant 0 : index
    %c0_1 = arith.constant 0 : index
    %3 = vector.load %arg14[%c0, %c0_1] : memref<16x32xf32, #tpu.memory_space<vmem>>, vector<16x32xf32>
    %4 = arith.truncf %3 : vector<16x32xf32> to vector<16x32xbf16>
    %c0_2 = arith.constant 0 : index
    %c0_3 = arith.constant 0 : index
    %c0_4 = arith.constant 0 : index
    %5 = vector.load %arg4[%c0_2, %c0_3, %c0_4] : memref<1x32x96xbf16, #tpu.memory_space<vmem>>, vector<1x32x96xbf16>
    %6 = vector.shape_cast %5 : vector<1x32x96xbf16> to vector<32x96xbf16>
    %cst = arith.constant dense<0.000000e+00> : vector<16x96xf32>
    %7 = tpu.matmul %4, %6, %cst {dimension_numbers = #tpu.dot_dimension_numbers<[1], [0], [0], [1], [0, 0, 1, 1], [], []>} : vector<16x32xbf16>, vector<32x96xbf16>, vector<16x96xf32> -> vector<16x96xf32>
    %8 = vector.shape_cast %7 : vector<16x96xf32> to vector<2x8x96xf32>
    %c0_5 = arith.constant 0 : index
    %c0_6 = arith.constant 0 : index
    %c0_7 = arith.constant 0 : index
    %9 = vector.load %arg2[%c0_5, %c0_6, %c0_7] : memref<2x1x8xf32, #tpu.memory_space<vmem>>, vector<2x1x8xf32>
    %10 = vector.extract_strided_slice %8 {offsets = [0, 0, 0], sizes = [2, 8, 8], strides = [1, 1, 1]} : vector<2x8x96xf32> to vector<2x8x8xf32>
    %11 = arith.truncf %10 : vector<2x8x8xf32> to vector<2x8x8xbf16>
    %12 = vector.extract_strided_slice %8 {offsets = [0, 0, 32], sizes = [2, 8, 8], strides = [1, 1, 1]} : vector<2x8x96xf32> to vector<2x8x8xf32>
    %13 = arith.truncf %12 : vector<2x8x8xf32> to vector<2x8x8xbf16>
    %14 = vector.extract_strided_slice %8 {offsets = [0, 0, 64], sizes = [2, 8, 8], strides = [1, 1, 1]} : vector<2x8x96xf32> to vector<2x8x8xf32>
    %15 = arith.truncf %14 : vector<2x8x8xf32> to vector<2x8x8xbf16>
    "tpu.trace_start"() <{level = 10 : i32, message = "nqd,nkd->nqk"}> : () -> ()
    %cst_8 = arith.constant dense<0.000000e+00> : vector<2x8x8xf32>
    %16 = tpu.matmul %11, %13, %cst_8 {dimension_numbers = #tpu.dot_dimension_numbers<[2], [2], [1], [1], [0, 0, 0, 1, 1, 1], [0], [0]>} : vector<2x8x8xbf16>, vector<2x8x8xbf16>, vector<2x8x8xf32> -> vector<2x8x8xf32>
    "tpu.trace_stop"() : () -> ()
    %17 = vector.broadcast %9 : vector<2x1x8xf32> to vector<2x8x8xf32>
    %18 = arith.addf %16, %17 : vector<2x8x8xf32>
    %cst_9 = arith.constant dense<0xFF800000> : vector<2x8xf32>
    %19 = vector.multi_reduction <maximumf>, %18, %cst_9 [2] : vector<2x8x8xf32> to vector<2x8xf32>
    %20 = vector.shape_cast %19 : vector<2x8xf32> to vector<2x8x1xf32>
    %21 = vector.broadcast %20 : vector<2x8x1xf32> to vector<2x8x8xf32>
    %22 = arith.subf %18, %21 : vector<2x8x8xf32>
    %23 = math.exp %22 : vector<2x8x8xf32>
    %cst_10 = arith.constant dense<0.000000e+00> : vector<2x8xf32>
    %24 = vector.multi_reduction <add>, %23, %cst_10 [2] : vector<2x8x8xf32> to vector<2x8xf32>
    %25 = vector.shape_cast %24 : vector<2x8xf32> to vector<2x8x1xf32>
    %26 = tpu.reciprocal %25 {approx = true} : vector<2x8x1xf32> -> vector<2x8x1xf32>
    %27 = vector.broadcast %26 : vector<2x8x1xf32> to vector<2x8x8xf32>
    %28 = arith.mulf %23, %27 : vector<2x8x8xf32>
    %29 = arith.truncf %28 : vector<2x8x8xf32> to vector<2x8x8xbf16>
    "tpu.trace_start"() <{level = 10 : i32, message = "nqk,nkd->nqd"}> : () -> ()
    %cst_11 = arith.constant dense<0.000000e+00> : vector<2x8x8xf32>
    %30 = tpu.matmul %29, %15, %cst_11 {dimension_numbers = #tpu.dot_dimension_numbers<[2], [1], [1], [2], [0, 0, 0, 1, 1, 2], [0], [0]>} : vector<2x8x8xbf16>, vector<2x8x8xbf16>, vector<2x8x8xf32> -> vector<2x8x8xf32>
    "tpu.trace_stop"() : () -> ()
    %c0_12 = arith.constant 0 : index
    %c0_13 = arith.constant 0 : index
    %c0_14 = arith.constant 0 : index
    %31 = vector.load %arg15[%c0_12, %c0_13, %c0_14] : memref<2x8x32xf32, #tpu.memory_space<vmem>>, vector<2x8x8xf32>
    tpu.vector_store %arg15[%c0_12, %c0_13, %c0_14], %30 {strides = array<i32>} : memref<2x8x32xf32, #tpu.memory_space<vmem>>, vector<2x8x8xf32>,
    %32 = vector.extract_strided_slice %8 {offsets = [0, 0, 8], sizes = [2, 8, 8], strides = [1, 1, 1]} : vector<2x8x96xf32> to vector<2x8x8xf32>
    %33 = arith.truncf %32 : vector<2x8x8xf32> to vector<2x8x8xbf16>
    %34 = vector.extract_strided_slice %8 {offsets = [0, 0, 40], sizes = [2, 8, 8], strides = [1, 1, 1]} : vector<2x8x96xf32> to vector<2x8x8xf32>
    %35 = arith.truncf %34 : vector<2x8x8xf32> to vector<2x8x8xbf16>
    %36 = vector.extract_strided_slice %8 {offsets = [0, 0, 72], sizes = [2, 8, 8], strides = [1, 1, 1]} : vector<2x8x96xf32> to vector<2x8x8xf32>
    %37 = arith.truncf %36 : vector<2x8x8xf32> to vector<2x8x8xbf16>
    "tpu.trace_start"() <{level = 10 : i32, message = "nqd,nkd->nqk"}> : () -> ()
    %cst_15 = arith.constant dense<0.000000e+00> : vector<2x8x8xf32>
    %38 = tpu.matmul %33, %35, %cst_15 {dimension_numbers = #tpu.dot_dimension_numbers<[2], [2], [1], [1], [0, 0, 0, 1, 1, 1], [0], [0]>} : vector<2x8x8xbf16>, vector<2x8x8xbf16>, vector<2x8x8xf32> -> vector<2x8x8xf32>
    "tpu.trace_stop"() : () -> ()
    %39 = vector.broadcast %9 : vector<2x1x8xf32> to vector<2x8x8xf32>
    %40 = arith.addf %38, %39 : vector<2x8x8xf32>
    %cst_16 = arith.constant dense<0xFF800000> : vector<2x8xf32>
    %41 = vector.multi_reduction <maximumf>, %40, %cst_16 [2] : vector<2x8x8xf32> to vector<2x8xf32>
    %42 = vector.shape_cast %41 : vector<2x8xf32> to vector<2x8x1xf32>
    %43 = vector.broadcast %42 : vector<2x8x1xf32> to vector<2x8x8xf32>
    %44 = arith.subf %40, %43 : vector<2x8x8xf32>
    %45 = math.exp %44 : vector<2x8x8xf32>
    %cst_17 = arith.constant dense<0.000000e+00> : vector<2x8xf32>
    %46 = vector.multi_reduction <add>, %45, %cst_17 [2] : vector<2x8x8xf32> to vector<2x8xf32>
    %47 = vector.shape_cast %46 : vector<2x8xf32> to vector<2x8x1xf32>
    %48 = tpu.reciprocal %47 {approx = true} : vector<2x8x1xf32> -> vector<2x8x1xf32>
    %49 = vector.broadcast %48 : vector<2x8x1xf32> to vector<2x8x8xf32>
    %50 = arith.mulf %45, %49 : vector<2x8x8xf32>
    %51 = arith.truncf %50 : vector<2x8x8xf32> to vector<2x8x8xbf16>
    "tpu.trace_start"() <{level = 10 : i32, message = "nqk,nkd->nqd"}> : () -> ()
    %cst_18 = arith.constant dense<0.000000e+00> : vector<2x8x8xf32>
    %52 = tpu.matmul %51, %37, %cst_18 {dimension_numbers = #tpu.dot_dimension_numbers<[2], [1], [1], [2], [0, 0, 0, 1, 1, 2], [0], [0]>} : vector<2x8x8xbf16>, vector<2x8x8xbf16>, vector<2x8x8xf32> -> vector<2x8x8xf32>
    "tpu.trace_stop"() : () -> ()
    %c0_19 = arith.constant 0 : index
    %c0_20 = arith.constant 0 : index
    %c8 = arith.constant 8 : index
    %53 = vector.load %arg15[%c0_19, %c0_20, %c8] : memref<2x8x32xf32, #tpu.memory_space<vmem>>, vector<2x8x8xf32>
    tpu.vector_store %arg15[%c0_19, %c0_20, %c8], %52 {strides = array<i32>} : memref<2x8x32xf32, #tpu.memory_space<vmem>>, vector<2x8x8xf32>,
    %54 = vector.extract_strided_slice %8 {offsets = [0, 0, 16], sizes = [2, 8, 8], strides = [1, 1, 1]} : vector<2x8x96xf32> to vector<2x8x8xf32>
    %55 = arith.truncf %54 : vector<2x8x8xf32> to vector<2x8x8xbf16>
    %56 = vector.extract_strided_slice %8 {offsets = [0, 0, 48], sizes = [2, 8, 8], strides = [1, 1, 1]} : vector<2x8x96xf32> to vector<2x8x8xf32>
    %57 = arith.truncf %56 : vector<2x8x8xf32> to vector<2x8x8xbf16>
    %58 = vector.extract_strided_slice %8 {offsets = [0, 0, 80], sizes = [2, 8, 8], strides = [1, 1, 1]} : vector<2x8x96xf32> to vector<2x8x8xf32>
    %59 = arith.truncf %58 : vector<2x8x8xf32> to vector<2x8x8xbf16>
    "tpu.trace_start"() <{level = 10 : i32, message = "nqd,nkd->nqk"}> : () -> ()
    %cst_21 = arith.constant dense<0.000000e+00> : vector<2x8x8xf32>
    %60 = tpu.matmul %55, %57, %cst_21 {dimension_numbers = #tpu.dot_dimension_numbers<[2], [2], [1], [1], [0, 0, 0, 1, 1, 1], [0], [0]>} : vector<2x8x8xbf16>, vector<2x8x8xbf16>, vector<2x8x8xf32> -> vector<2x8x8xf32>
    "tpu.trace_stop"() : () -> ()
    %61 = vector.broadcast %9 : vector<2x1x8xf32> to vector<2x8x8xf32>
    %62 = arith.addf %60, %61 : vector<2x8x8xf32>
    %cst_22 = arith.constant dense<0xFF800000> : vector<2x8xf32>
    %63 = vector.multi_reduction <maximumf>, %62, %cst_22 [2] : vector<2x8x8xf32> to vector<2x8xf32>
    %64 = vector.shape_cast %63 : vector<2x8xf32> to vector<2x8x1xf32>
    %65 = vector.broadcast %64 : vector<2x8x1xf32> to vector<2x8x8xf32>
    %66 = arith.subf %62, %65 : vector<2x8x8xf32>
    %67 = math.exp %66 : vector<2x8x8xf32>
    %cst_23 = arith.constant dense<0.000000e+00> : vector<2x8xf32>
    %68 = vector.multi_reduction <add>, %67, %cst_23 [2] : vector<2x8x8xf32> to vector<2x8xf32>
    %69 = vector.shape_cast %68 : vector<2x8xf32> to vector<2x8x1xf32>
    %70 = tpu.reciprocal %69 {approx = true} : vector<2x8x1xf32> -> vector<2x8x1xf32>
    %71 = vector.broadcast %70 : vector<2x8x1xf32> to vector<2x8x8xf32>
    %72 = arith.mulf %67, %71 : vector<2x8x8xf32>
    %73 = arith.truncf %72 : vector<2x8x8xf32> to vector<2x8x8xbf16>
    "tpu.trace_start"() <{level = 10 : i32, message = "nqk,nkd->nqd"}> : () -> ()
    %cst_24 = arith.constant dense<0.000000e+00> : vector<2x8x8xf32>
    %74 = tpu.matmul %73, %59, %cst_24 {dimension_numbers = #tpu.dot_dimension_numbers<[2], [1], [1], [2], [0, 0, 0, 1, 1, 2], [0], [0]>} : vector<2x8x8xbf16>, vector<2x8x8xbf16>, vector<2x8x8xf32> -> vector<2x8x8xf32>
    "tpu.trace_stop"() : () -> ()
    %c0_25 = arith.constant 0 : index
    %c0_26 = arith.constant 0 : index
    %c16 = arith.constant 16 : index
    %75 = vector.load %arg15[%c0_25, %c0_26, %c16] : memref<2x8x32xf32, #tpu.memory_space<vmem>>, vector<2x8x8xf32>
    tpu.vector_store %arg15[%c0_25, %c0_26, %c16], %74 {strides = array<i32>} : memref<2x8x32xf32, #tpu.memory_space<vmem>>, vector<2x8x8xf32>,
    %76 = vector.extract_strided_slice %8 {offsets = [0, 0, 24], sizes = [2, 8, 8], strides = [1, 1, 1]} : vector<2x8x96xf32> to vector<2x8x8xf32>
    %77 = arith.truncf %76 : vector<2x8x8xf32> to vector<2x8x8xbf16>
    %78 = vector.extract_strided_slice %8 {offsets = [0, 0, 56], sizes = [2, 8, 8], strides = [1, 1, 1]} : vector<2x8x96xf32> to vector<2x8x8xf32>
    %79 = arith.truncf %78 : vector<2x8x8xf32> to vector<2x8x8xbf16>
    %80 = vector.extract_strided_slice %8 {offsets = [0, 0, 88], sizes = [2, 8, 8], strides = [1, 1, 1]} : vector<2x8x96xf32> to vector<2x8x8xf32>
    %81 = arith.truncf %80 : vector<2x8x8xf32> to vector<2x8x8xbf16>
    "tpu.trace_start"() <{level = 10 : i32, message = "nqd,nkd->nqk"}> : () -> ()
    %cst_27 = arith.constant dense<0.000000e+00> : vector<2x8x8xf32>
    %82 = tpu.matmul %77, %79, %cst_27 {dimension_numbers = #tpu.dot_dimension_numbers<[2], [2], [1], [1], [0, 0, 0, 1, 1, 1], [0], [0]>} : vector<2x8x8xbf16>, vector<2x8x8xbf16>, vector<2x8x8xf32> -> vector<2x8x8xf32>
    "tpu.trace_stop"() : () -> ()
    %83 = vector.broadcast %9 : vector<2x1x8xf32> to vector<2x8x8xf32>
    %84 = arith.addf %82, %83 : vector<2x8x8xf32>
    %cst_28 = arith.constant dense<0xFF800000> : vector<2x8xf32>
    %85 = vector.multi_reduction <maximumf>, %84, %cst_28 [2] : vector<2x8x8xf32> to vector<2x8xf32>
    %86 = vector.shape_cast %85 : vector<2x8xf32> to vector<2x8x1xf32>
    %87 = vector.broadcast %86 : vector<2x8x1xf32> to vector<2x8x8xf32>
    %88 = arith.subf %84, %87 : vector<2x8x8xf32>
    %89 = math.exp %88 : vector<2x8x8xf32>
    %cst_29 = arith.constant dense<0.000000e+00> : vector<2x8xf32>
    %90 = vector.multi_reduction <add>, %89, %cst_29 [2] : vector<2x8x8xf32> to vector<2x8xf32>
    %91 = vector.shape_cast %90 : vector<2x8xf32> to vector<2x8x1xf32>
    %92 = tpu.reciprocal %91 {approx = true} : vector<2x8x1xf32> -> vector<2x8x1xf32>
    %93 = vector.broadcast %92 : vector<2x8x1xf32> to vector<2x8x8xf32>
    %94 = arith.mulf %89, %93 : vector<2x8x8xf32>
    %95 = arith.truncf %94 : vector<2x8x8xf32> to vector<2x8x8xbf16>
    "tpu.trace_start"() <{level = 10 : i32, message = "nqk,nkd->nqd"}> : () -> ()
    %cst_30 = arith.constant dense<0.000000e+00> : vector<2x8x8xf32>
    %96 = tpu.matmul %95, %81, %cst_30 {dimension_numbers = #tpu.dot_dimension_numbers<[2], [1], [1], [2], [0, 0, 0, 1, 1, 2], [0], [0]>} : vector<2x8x8xbf16>, vector<2x8x8xbf16>, vector<2x8x8xf32> -> vector<2x8x8xf32>
    "tpu.trace_stop"() : () -> ()
    %c0_31 = arith.constant 0 : index
    %c0_32 = arith.constant 0 : index
    %c24 = arith.constant 24 : index
    %97 = vector.load %arg15[%c0_31, %c0_32, %c24] : memref<2x8x32xf32, #tpu.memory_space<vmem>>, vector<2x8x8xf32>
    tpu.vector_store %arg15[%c0_31, %c0_32, %c24], %96 {strides = array<i32>} : memref<2x8x32xf32, #tpu.memory_space<vmem>>, vector<2x8x8xf32>,
    %c0_33 = arith.constant 0 : index
    %c0_34 = arith.constant 0 : index
    %c0_35 = arith.constant 0 : index
    %98 = vector.load %arg15[%c0_33, %c0_34, %c0_35] : memref<2x8x32xf32, #tpu.memory_space<vmem>>, vector<2x8x32xf32>
    %99 = vector.shape_cast %98 : vector<2x8x32xf32> to vector<16x32xf32>
    %100 = arith.truncf %99 : vector<16x32xf32> to vector<16x32xbf16>
    %c0_36 = arith.constant 0 : index
    %c0_37 = arith.constant 0 : index
    %c0_38 = arith.constant 0 : index
    %101 = vector.load %arg5[%c0_36, %c0_37, %c0_38] : memref<1x32x32xbf16, #tpu.memory_space<vmem>>, vector<1x32x32xbf16>
    %102 = vector.shape_cast %101 : vector<1x32x32xbf16> to vector<32x32xbf16>
    %cst_39 = arith.constant dense<0.000000e+00> : vector<16x32xf32>
    %103 = tpu.matmul %100, %102, %cst_39 {dimension_numbers = #tpu.dot_dimension_numbers<[1], [0], [0], [1], [0, 0, 1, 1], [], []>} : vector<16x32xbf16>, vector<32x32xbf16>, vector<16x32xf32> -> vector<16x32xf32>
    %104 = arith.addf %3, %103 : vector<16x32xf32>
    %c0_40 = arith.constant 0 : index
    %c0_41 = arith.constant 0 : index
    %c0_42 = arith.constant 0 : index
    %105 = vector.load %arg6[%c0_40, %c0_41, %c0_42] : memref<1x1x32xf32, #tpu.memory_space<vmem>>, vector<1x1x32xf32>
    %106 = vector.shape_cast %105 : vector<1x1x32xf32> to vector<1x32xf32>
    %c0_43 = arith.constant 0 : index
    %c0_44 = arith.constant 0 : index
    %c0_45 = arith.constant 0 : index
    %107 = vector.load %arg7[%c0_43, %c0_44, %c0_45] : memref<1x1x32xf32, #tpu.memory_space<vmem>>, vector<1x1x32xf32>
    %108 = vector.shape_cast %107 : vector<1x1x32xf32> to vector<1x32xf32>
    %cst_46 = arith.constant dense<0.000000e+00> : vector<32xf32>
    %109 = vector.multi_reduction <add>, %104, %cst_46 [0] : vector<16x32xf32> to vector<32xf32>
    %110 = vector.shape_cast %109 : vector<32xf32> to vector<1x32xf32>
    %cst_47 = arith.constant 6.250000e-02 : f32
    %111 = vector.broadcast %cst_47 : f32 to vector<1x32xf32>
    %112 = arith.mulf %110, %111 : vector<1x32xf32>
    %113 = arith.mulf %104, %104 : vector<16x32xf32>
    %cst_48 = arith.constant dense<0.000000e+00> : vector<32xf32>
    %114 = vector.multi_reduction <add>, %113, %cst_48 [0] : vector<16x32xf32> to vector<32xf32>
    %115 = vector.shape_cast %114 : vector<32xf32> to vector<1x32xf32>
    %cst_49 = arith.constant 6.250000e-02 : f32
    %116 = vector.broadcast %cst_49 : f32 to vector<1x32xf32>
    %117 = arith.mulf %115, %116 : vector<1x32xf32>
    %118 = arith.mulf %112, %112 : vector<1x32xf32>
    %119 = arith.subf %117, %118 : vector<1x32xf32>
    %cst_50 = arith.constant 0.000000e+00 : f32
    %120 = vector.broadcast %cst_50 : f32 to vector<1x32xf32>
    %121 = arith.maximumf %119, %120 : vector<1x32xf32>
    %122 = vector.broadcast %112 : vector<1x32xf32> to vector<16x32xf32>
    %123 = arith.subf %104, %122 : vector<16x32xf32>
    %cst_51 = arith.constant 9.99999974E-6 : f32
    %124 = vector.broadcast %cst_51 : f32 to vector<1x32xf32>
    %125 = arith.addf %121, %124 : vector<1x32xf32>
    %126 = math.rsqrt %125 : vector<1x32xf32>
    %127 = vector.broadcast %126 : vector<1x32xf32> to vector<16x32xf32>
    %128 = arith.mulf %123, %127 : vector<16x32xf32>
    %129 = vector.broadcast %106 : vector<1x32xf32> to vector<16x32xf32>
    %130 = arith.mulf %128, %129 : vector<16x32xf32>
    %131 = vector.broadcast %108 : vector<1x32xf32> to vector<16x32xf32>
    %132 = arith.addf %130, %131 : vector<16x32xf32>
    %133 = arith.truncf %132 : vector<16x32xf32> to vector<16x32xbf16>
    %c0_52 = arith.constant 0 : index
    %c0_53 = arith.constant 0 : index
    %c0_54 = arith.constant 0 : index
    %134 = vector.load %arg8[%c0_52, %c0_53, %c0_54] : memref<1x32x64xbf16, #tpu.memory_space<vmem>>, vector<1x32x64xbf16>
    %135 = vector.shape_cast %134 : vector<1x32x64xbf16> to vector<32x64xbf16>
    %cst_55 = arith.constant dense<0.000000e+00> : vector<16x64xf32>
    %136 = tpu.matmul %133, %135, %cst_55 {dimension_numbers = #tpu.dot_dimension_numbers<[1], [0], [0], [1], [0, 0, 1, 1], [], []>} : vector<16x32xbf16>, vector<32x64xbf16>, vector<16x64xf32> -> vector<16x64xf32>
    %c0_56 = arith.constant 0 : index
    %c0_57 = arith.constant 0 : index
    %c0_58 = arith.constant 0 : index
    %137 = vector.load %arg9[%c0_56, %c0_57, %c0_58] : memref<1x1x64xf32, #tpu.memory_space<vmem>>, vector<1x1x64xf32>
    %138 = vector.shape_cast %137 : vector<1x1x64xf32> to vector<1x64xf32>
    %139 = vector.broadcast %138 : vector<1x64xf32> to vector<16x64xf32>
    %140 = arith.addf %136, %139 : vector<16x64xf32>
    %cst_59 = arith.constant 0.000000e+00 : f32
    %141 = vector.broadcast %cst_59 : f32 to vector<16x64xf32>
    %142 = arith.maximumf %140, %141 : vector<16x64xf32>
    %143 = arith.truncf %142 : vector<16x64xf32> to vector<16x64xbf16>
    %c0_60 = arith.constant 0 : index
    %c0_61 = arith.constant 0 : index
    %c0_62 = arith.constant 0 : index
    %144 = vector.load %arg10[%c0_60, %c0_61, %c0_62] : memref<1x64x32xbf16, #tpu.memory_space<vmem>>, vector<1x64x32xbf16>
    %145 = vector.shape_cast %144 : vector<1x64x32xbf16> to vector<64x32xbf16>
    %cst_63 = arith.constant dense<0.000000e+00> : vector<16x32xf32>
    %146 = tpu.matmul %143, %145, %cst_63 {dimension_numbers = #tpu.dot_dimension_numbers<[1], [0], [0], [1], [0, 0, 1, 1], [], []>} : vector<16x64xbf16>, vector<64x32xbf16>, vector<16x32xf32> -> vector<16x32xf32>
    %c0_64 = arith.constant 0 : index
    %c0_65 = arith.constant 0 : index
    %c0_66 = arith.constant 0 : index
    %147 = vector.load %arg11[%c0_64, %c0_65, %c0_66] : memref<1x1x32xf32, #tpu.memory_space<vmem>>, vector<1x1x32xf32>
    %148 = vector.shape_cast %147 : vector<1x1x32xf32> to vector<1x32xf32>
    %149 = vector.broadcast %148 : vector<1x32xf32> to vector<16x32xf32>
    %150 = arith.addf %146, %149 : vector<16x32xf32>
    %151 = arith.addf %132, %150 : vector<16x32xf32>
    %c0_67 = arith.constant 0 : index
    %c0_68 = arith.constant 0 : index
    %c0_69 = arith.constant 0 : index
    %152 = vector.load %arg12[%c0_67, %c0_68, %c0_69] : memref<1x1x32xf32, #tpu.memory_space<vmem>>, vector<1x1x32xf32>
    %153 = vector.shape_cast %152 : vector<1x1x32xf32> to vector<1x32xf32>
    %c0_70 = arith.constant 0 : index
    %c0_71 = arith.constant 0 : index
    %c0_72 = arith.constant 0 : index
    %154 = vector.load %arg13[%c0_70, %c0_71, %c0_72] : memref<1x1x32xf32, #tpu.memory_space<vmem>>, vector<1x1x32xf32>
    %155 = vector.shape_cast %154 : vector<1x1x32xf32> to vector<1x32xf32>
    %cst_73 = arith.constant dense<0.000000e+00> : vector<32xf32>
    %156 = vector.multi_reduction <add>, %151, %cst_73 [0] : vector<16x32xf32> to vector<32xf32>
    %157 = vector.shape_cast %156 : vector<32xf32> to vector<1x32xf32>
    %cst_74 = arith.constant 6.250000e-02 : f32
    %158 = vector.broadcast %cst_74 : f32 to vector<1x32xf32>
    %159 = arith.mulf %157, %158 : vector<1x32xf32>
    %160 = arith.mulf %151, %151 : vector<16x32xf32>
    %cst_75 = arith.constant dense<0.000000e+00> : vector<32xf32>
    %161 = vector.multi_reduction <add>, %160, %cst_75 [0] : vector<16x32xf32> to vector<32xf32>
    %162 = vector.shape_cast %161 : vector<32xf32> to vector<1x32xf32>
    %cst_76 = arith.constant 6.250000e-02 : f32
    %163 = vector.broadcast %cst_76 : f32 to vector<1x32xf32>
    %164 = arith.mulf %162, %163 : vector<1x32xf32>
    %165 = arith.mulf %159, %159 : vector<1x32xf32>
    %166 = arith.subf %164, %165 : vector<1x32xf32>
    %cst_77 = arith.constant 0.000000e+00 : f32
    %167 = vector.broadcast %cst_77 : f32 to vector<1x32xf32>
    %168 = arith.maximumf %166, %167 : vector<1x32xf32>
    %169 = vector.broadcast %159 : vector<1x32xf32> to vector<16x32xf32>
    %170 = arith.subf %151, %169 : vector<16x32xf32>
    %cst_78 = arith.constant 9.99999974E-6 : f32
    %171 = vector.broadcast %cst_78 : f32 to vector<1x32xf32>
    %172 = arith.addf %168, %171 : vector<1x32xf32>
    %173 = math.rsqrt %172 : vector<1x32xf32>
    %174 = vector.broadcast %173 : vector<1x32xf32> to vector<16x32xf32>
    %175 = arith.mulf %170, %174 : vector<16x32xf32>
    %176 = vector.broadcast %153 : vector<1x32xf32> to vector<16x32xf32>
    %177 = arith.mulf %175, %176 : vector<16x32xf32>
    %178 = vector.broadcast %155 : vector<1x32xf32> to vector<16x32xf32>
    %179 = arith.addf %177, %178 : vector<16x32xf32>
    %c0_79 = arith.constant 0 : index
    %c0_80 = arith.constant 0 : index
    %180 = vector.load %arg3[%c0_79, %c0_80] : memref<16x1xf32, #tpu.memory_space<vmem>>, vector<16x1xf32>
    %181 = vector.broadcast %180 : vector<16x1xf32> to vector<16x32xf32>
    %182 = arith.mulf %179, %181 : vector<16x32xf32>
    %c0_81 = arith.constant 0 : index
    %c0_82 = arith.constant 0 : index
    %183 = vector.load %arg14[%c0_81, %c0_82] : memref<16x32xf32, #tpu.memory_space<vmem>>, vector<16x32xf32>
    tpu.vector_store %arg14[%c0_81, %c0_82], %182 {strides = array<i32>} : memref<16x32xf32, #tpu.memory_space<vmem>>, vector<16x32xf32>,
    return
  }
  func.func @transform_0(%arg0: i32) -> (i32, i32) {
    %c0_i32 = arith.constant 0 : i32
    %c0_i32_0 = arith.constant 0 : i32
    %c0_i32_1 = arith.constant 0 : i32
    return %c0_i32, %c0_i32_0 : i32, i32
  }
  func.func @transform_1(%arg0: i32) -> (i32, i32, i32) {
    %c0_i32 = arith.constant 0 : i32
    %c0_i32_0 = arith.constant 0 : i32
    %c0_i32_1 = arith.constant 0 : i32
    %c0_i32_2 = arith.constant 0 : i32
    return %c0_i32, %c0_i32_0, %c0_i32_1 : i32, i32, i32
  }
  func.func @transform_2(%arg0: i32) -> (i32, i32) {
    %c0_i32 = arith.constant 0 : i32
    %c0_i32_0 = arith.constant 0 : i32
    %c0_i32_1 = arith.constant 0 : i32
    return %c0_i32, %c0_i32_0 : i32, i32
  }
  func.func @transform_3(%arg0: i32) -> (i32, i32, i32) {
    %c0_i32 = arith.constant 0 : i32
    %c0_i32_0 = arith.constant 0 : i32
    %c0_i32_1 = arith.constant 0 : i32
    return %arg0, %c0_i32, %c0_i32_0 : i32, i32, i32
  }
  func.func @transform_4(%arg0: i32) -> (i32, i32, i32) {
    %c0_i32 = arith.constant 0 : i32
    %c0_i32_0 = arith.constant 0 : i32
    %c0_i32_1 = arith.constant 0 : i32
    return %arg0, %c0_i32, %c0_i32_0 : i32, i32, i32
  }
  func.func @transform_5(%arg0: i32) -> (i32, i32, i32) {
    %c0_i32 = arith.constant 0 : i32
    %c0_i32_0 = arith.constant 0 : i32
    %c0_i32_1 = arith.constant 0 : i32
    return %arg0, %c0_i32, %c0_i32_0 : i32, i32, i32
  }
  func.func @transform_6(%arg0: i32) -> (i32, i32, i32) {
    %c0_i32 = arith.constant 0 : i32
    %c0_i32_0 = arith.constant 0 : i32
    %c0_i32_1 = arith.constant 0 : i32
    return %arg0, %c0_i32, %c0_i32_0 : i32, i32, i32
  }
  func.func @transform_7(%arg0: i32) -> (i32, i32, i32) {
    %c0_i32 = arith.constant 0 : i32
    %c0_i32_0 = arith.constant 0 : i32
    %c0_i32_1 = arith.constant 0 : i32
    return %arg0, %c0_i32, %c0_i32_0 : i32, i32, i32
  }
  func.func @transform_8(%arg0: i32) -> (i32, i32, i32) {
    %c0_i32 = arith.constant 0 : i32
    %c0_i32_0 = arith.constant 0 : i32
    %c0_i32_1 = arith.constant 0 : i32
    return %arg0, %c0_i32, %c0_i32_0 : i32, i32, i32
  }
  func.func @transform_9(%arg0: i32) -> (i32, i32, i32) {
    %c0_i32 = arith.constant 0 : i32
    %c0_i32_0 = arith.constant 0 : i32
    %c0_i32_1 = arith.constant 0 : i32
    return %arg0, %c0_i32, %c0_i32_0 : i32, i32, i32
  }
  func.func @transform_10(%arg0: i32) -> (i32, i32, i32) {
    %c0_i32 = arith.constant 0 : i32
    %c0_i32_0 = arith.constant 0 : i32
    %c0_i32_1 = arith.constant 0 : i32
    return %arg0, %c0_i32, %c0_i32_0 : i32, i32, i32
  }
  func.func @transform_11(%arg0: i32) -> (i32, i32, i32) {
    %c0_i32 = arith.constant 0 : i32
    %c0_i32_0 = arith.constant 0 : i32
    %c0_i32_1 = arith.constant 0 : i32
    return %arg0, %c0_i32, %c0_i32_0 : i32, i32, i32
  }
  func.func @transform_12(%arg0: i32) -> (i32, i32, i32) {
    %c0_i32 = arith.constant 0 : i32
    %c0_i32_0 = arith.constant 0 : i32
    %c0_i32_1 = arith.constant 0 : i32
    return %arg0, %c0_i32, %c0_i32_0 : i32, i32, i32
  }
  func.func @transform_13(%arg0: i32) -> (i32, i32) {
    %c0_i32 = arith.constant 0 : i32
    %c0_i32_0 = arith.constant 0 : i32
    %c0_i32_1 = arith.constant 0 : i32
    return %c0_i32, %c0_i32_0 : i32, i32
  }
}

</mosaic_0001>

<bundles_post_ra>
// kernel: transformer_encoder.1
= control target key start
LH: loop header
LB: loop body
LE: loop exit
PB: predicated region body
PF: predicated region fallthrough
CT: control target
= control target key end

     0   :  { %s2826_s0 = inlined_call_operand.vmem [shape: f32[16,32], index: 0, kind: input, shape index: {}]   ;;  %s2827_s1 = inlined_call_operand.vmem [shape: f32[2,1,8], index: 1, kind: input, shape index: {}]   ;;  %s2828_s2 = inlined_call_operand.vmem [shape: f32[16,1], index: 2, kind: input, shape index: {}]   ;;  %s2829_s3 = inlined_call_operand.vmem [shape: bf16[2,32,96], index: 3, kind: input, shape index: {}]   ;;  %s2830_s4 = inlined_call_operand.vmem [shape: bf16[2,32,32], index: 4, kind: input, shape index: {}]   ;;  %s2831_s5 = inlined_call_operand.vmem [shape: f32[2,1,32], index: 5, kind: input, shape index: {}]   ;;  %s2832_s6 = inlined_call_operand.vmem [shape: f32[2,1,32], index: 6, kind: input, shape index: {}]   ;;  %s2833_s7 = inlined_call_operand.vmem [shape: bf16[2,32,64], index: 7, kind: input, shape index: {}]   ;;  %s2834_s8 = inlined_call_operand.vmem [shape: f32[2,1,64], index: 8, kind: input, shape index: {}]   ;;  %s2835_s9 = inlined_call_operand.vmem [shape: bf16[2,64,32], index: 9, kind: input, shape index: {}]   ;;  %s2836_s10 = inlined_call_operand.vmem [shape: f32[2,1,32], index: 10, kind: input, shape index: {}]   ;;  %s2837_s11 = inlined_call_operand.vmem [shape: f32[2,1,32], index: 11, kind: input, shape index: {}]   ;;  %s2838_s12 = inlined_call_operand.vmem [shape: f32[2,1,32], index: 12, kind: input, shape index: {}]   ;;  %s2839_s13 = inlined_call_operand.hbm [shape: f32[16,32], index: 13, kind: output, shape index: {}]  }
   0x1   :  { %2842 = sst [smem:[#allocation7_spill]] %s2829_s3 }
   0x2   :  { %2843 = sst [smem:[#allocation8_spill]] %s2830_s4 }
   0x3   :  { %2844 = sst [smem:[#allocation9_spill]] %s2833_s7 }
   0x4   :  { %2845 = sst [smem:[#allocation10_spill]] %s2839_s13 }
   0x5   :  { %18 = vsyncpa [#allocation4], 0  ;;  %s2495_s25 = smov 0  }
   0x6 LB: > { %2846 = sst [smem:[#allocation6_spill]] %s2404_s25  ;;  %s2501_s26 = sadd.s32 4294967295, %s2404_s25   ;;  %s2404_s25 = sphi %s2495_s25, %s24_s25  }
   0x7   : > { %p2053_p0 = scmp.ge.s32.totalorder %s2404_s25, 1  ;;  %p461_p1 = scmp.lt.s32.totalorder %s2404_s25, 3 }
   0x9   : > { %p462_p2 = pnand %p2053_p0, %p461_p1 }
   0xa   : > { %p533_p3 = scmp.lt.s32.totalorder (!%p462_p2), %s2501_s26, 1  ;;  %s2847_s3 = sld [smem:[#allocation7_spill]] (!%p462_p2) }
   0xb   : > { %465 = sbr.rel (%p462_p2) target bundleno = 3621 (0xe25), region = 72  ;;  %s2848_s4 = sld [smem:[#allocation8_spill]] (!%p462_p2) }
   0xc   : > { %s2849_s7 = sld [smem:[#allocation9_spill]] (!%p462_p2)  ;;  %p2062_p4 = scmp.ne.s32.totalorder (!%p462_p2), %s2501_s26, 0 }
  0x12   : > { %s2507_s27 = scalar_select %p533_p3, %s2501_s26, 1 }
  0x13   : > { %575 = sbr.rel (%p2062_p4) target bundleno = 26 (0x1a), region = 76  ;;  %v576_v0 = vld [vmem:[%s2826_s0] sm:$0xff] (!%p2062_p4)  ;;  %vm578_vm0 = vcmask (!%p2062_p4), 261120   ;;  %v577_v1 = vld [vmem:[%s2826_s0 + $0x8] sm:$0xff] (!%p2062_p4) }
  0x14   : > { %s2105_s28 = sshll.u32 %s2507_s27, 4  ;;  %s556_s14 = scalar_lea.vmem %s2834_s8, %s2507_s27  ;;  %579 = vst.msk [vmem:[#allocation3] sm:$0xff] (!%p2062_p4), %vm578_vm0, %v576_v0  ;;  %580 = vst.msk [vmem:[#allocation3 + $0x8] sm:$0xff] (!%p2062_p4), %vm578_vm0, %v577_v1 }
  0x15   : > { %s537_s17 = scalar_lea.vmem %s2847_s3, %s2105_s28  ;;  %s2520_s20 = scalar_lea.vmem %s2848_s4, %s2105_s28 }
  0x16   : > { %s2529_s13 = scalar_lea.vmem %s2849_s7, %s2105_s28  ;;  %s2108_s15 = sshll.u32 %s2507_s27, 5 }
  0x17   : > { %s2539_s18 = scalar_lea.vmem %s2835_s9, %s2108_s15  ;;  %s564_s21 = scalar_lea.vmem %s2836_s10, %s2507_s27 }
  0x18   : > { %s567_s25 = scalar_lea.vmem %s2837_s11, %s2507_s27  ;;  %s570_s7 = scalar_lea.vmem %s2838_s12, %s2507_s27 }
  0x1a PF: > { %v2322_v2 = vld [vmem:[%s537_s17] sm:$0xff]   ;;  %v2406_v3 = vmov 0.0   ;;  %v2323_v4 = vld [vmem:[%s537_s17 + $0x8] sm:$0xff]   ;;  %vm2407_vm1 = vmmov 0   ;;  %vm600_vm2 = vcmask 261120   ;;  %s2408_s4 = smov 96  }
  0x1b   : > { %2155 = vmatprep.subr.bf16.mxu0 %v2406_v3  ;;  %2163 = vmatprep.subr.bf16.mxu1 %v2406_v3  ;;  %v2564_v5 = vld [vmem:[#allocation3] sm:$0xff]  ;;  %v2566_v6 = vld [vmem:[#allocation3 + $0x8] sm:$0xff]  ;;  %vm664_vm3 = vcmask 64512   ;;  %v2598_v18 = vld [vmem:[%s2827_s1] ss:$0 sm:$0xff]  ;;  %s2409_s22 = smov 64  }
  0x1c   : > { %2156 = vmatpush3.bf16.msra.mxu0 %v2322_v2  ;;  %2159 = vmatprep.mubr.msk.bf16.mxu0 %vm2407_vm1, %v2406_v3  ;;  %v583_v7 = vpack.c.bf16 %v2566_v6, %v2564_v5  ;;  %v2604_v23 = vld [vmem:[%s2827_s1 + $0x1] ss:$0 sm:$0xff]  ;;  %s2410_s28 = smov 88   ;;  %vm789_vm4 = vcmask 1043456   ;;  %s2411_s24 = smov 120   ;;  %vm1111_vm5 = vcmask 130112  }
  0x1d   : > { %2157 = vmatprep.subr.bf16.mxu0 %v2406_v3  ;;  %2165 = vmatprep.mubr.msk.bf16.mxu1 %vm2407_vm1, %v2406_v3  ;;  %s2412_s29 = smov 56   ;;  %s2413_s30 = smov 80   ;;  %vm1342_vm6 = vcmask 195712   ;;  %vm1573_vm7 = vcmask 261312   ;;  %vm1800_vm8 = vcmask 523264  }
  0x1e   : > { %s2414_s3 = smov 112   ;;  %s2415_s15 = smov 48  }
  0x1f   : > { %s2417_s17 = smov 104   ;;  %s2418_s23 = smov 40  }
  0x20   : > { %2158 = vmatpush3.bf16.msra.mxu0 %v2323_v4  ;;  %s2419_s16 = smov 8   ;;  %s2420_s19 = smov 16  }
  0x21   : > { %2169 = vmatprep.subr.bf16.mxu0 %v2406_v3  ;;  %p2291_p5 = scmp.eq.s32.totalorder %s2501_s26, 1 }
  0x23   : > { %2160 = vmatmul.mubr.msk.bf16.vlgmr.msra.gmra.mrb[0].mxu0 %vm600_vm2, %v583_v7 }
  0x24   : > { %2171 = vmatprep.mubr.msk.bf16.mxu0 %vm2407_vm1, %v2406_v3 }
  0xf6   : > { %v638_v8 = vpop.f32.mrb[0].mxu0 }
  0xf7   : > { %v2577_v9 = vpack.c.bf16 %v638_v8, %v638_v8  ;;  %v2161_v10 = vpop.f32.mrb[1].mxu0 }
  0xf8   : > { %v641_v11 = vpop.f32.mrb[2].mxu0 }
  0xf9   : > { %662 = vrot.lane.b32.xlu0 %v2577_v9, %s2408_s4  ;;  %v2162_v12 = vpop.f32.mrb[3].mxu0  ;;  %v2580_v13 = vpack.c.bf16 %v641_v11, %v641_v11 }
  0xfd   : > { %712 = vrot.lane.b32.xlu0 %v2580_v13, %s2408_s4  ;;  %s2416_s4 = smov 72  }
 0x16b   : > { %v663_v14 = vpop.permute.xlu0 %662 }
 0x16c   : > { %v669_v15 = vsel %vm664_vm3, %v663_v14, 0 }
 0x16d   : > { %2164 = vmatpush3.bf16.xpose.msra.mxu1 %v669_v15 }
 0x16e   : > { %2175 = vmatprep.subr.bf16.mxu1 %v2406_v3 }
 0x16f   : > { %v713_v16 = vpop.permute.xlu0 %712 }
 0x170   : > { %v718_v17 = vsel %vm664_vm3, %v713_v16, 0 }
 0x171   : > { %2170 = vmatpush3.bf16.xpose.msra.mxu0 %v718_v17 }
 0x172   : > { %2181 = vmatprep.subr.bf16.mxu0 %v2406_v3 }
 0x174   : > { %2166 = vmatmul.mubr.msk.bf16.vlgmr.msra.gmra.mrb[0].mxu1 %vm664_vm3, %v2577_v9 }
 0x175   : > { %2177 = vmatprep.mubr.msk.bf16.mxu1 %vm2407_vm1, %v2406_v3 }
 0x178   : > { %2172 = vmatmul.mubr.msk.bf16.vlgmr.msra.gmra.mrb[4].mxu0 %vm664_vm3, %v2580_v13 }
 0x179   : > { %2183 = vmatprep.mubr.msk.bf16.mxu0 %vm2407_vm1, %v2406_v3 }
 0x247   : > { %v705_v19 = vpop.f32.mrb[0].mxu1 }
 0x248   : > { %v706_v20 = vadd.f32 %v2598_v18, %v705_v19  ;;  %v2167_v21 = vpop.f32.mrb[1].mxu1 }
 0x249   : > { %v708_v22 = vpop.f32.mrb[2].mxu1 }
 0x24a   : > { %v2168_v24 = vpop.f32.mrb[3].mxu1  ;;  %v760_v25 = vsel %vm664_vm3, %v706_v20, -inf }
 0x24b   : > { %761 = vmax.xlane.f32.xlu1 %v760_v25  ;;  %v754_v26 = vpop.f32.mrb[4].mxu0 }
 0x24c   : > { %v755_v27 = vadd.f32 %v2604_v23, %v754_v26  ;;  %v2173_v28 = vpop.f32.mrb[5].mxu0 }
 0x24d   : > { %v757_v29 = vpop.f32.mrb[6].mxu0 }
 0x24e   : > { %v2174_v30 = vpop.f32.mrb[7].mxu0  ;;  %v763_v31 = vsel %vm664_vm3, %v755_v27, -inf }
 0x24f   : > { %764 = vmax.xlane.f32.xlu1 %v763_v31 }
 0x260   : > { %784 = vrot.lane.b32.xlu1 %v2577_v9, %s2409_s22 }
 0x264   : > { %833 = vrot.lane.b32.xlu1 %v2580_v13, %s2409_s22  ;;  %s2421_s22 = smov 24  }
 0x268   : > { %885 = vrot.lane.b32.xlu1 %v2577_v9, %s2410_s28 }
 0x2d8   : > { %v762_v32 = vpop.xlane.xlu1 %761 }
 0x2d9   : > { %v766_v33 = vsub.f32 %v706_v20, %v762_v32 }
 0x2db   : > { %v768_v34 = vmul.f32 1.442695, %v766_v33 }
 0x2dc   : > { %v765_v35 = vpop.xlane.xlu1 %764 }
 0x2dd   : > { %2332 = vpow2.f32 %v768_v34  ;;  %v767_v36 = vsub.f32 %v755_v27, %v765_v35 }
 0x2df   : > { %v770_v37 = vmul.f32 1.442695, %v767_v36 }
 0x2e0   : > { %v785_v38 = vpop.permute.xlu1 %784 }
 0x2e1   : > { %2334 = vpow2.f32 %v770_v37  ;;  %v791_v39 = vsel %vm789_vm4, %v785_v38, 0 }
 0x2e2   : > { %2176 = vmatpush3.bf16.msra.mxu1 %v791_v39 }
 0x2e3   : > { %2187 = vmatprep.subr.bf16.mxu1 %v2406_v3 }
 0x2e4   : > { %v834_v40 = vpop.permute.xlu1 %833 }
 0x2e5   : > { %v839_v41 = vsel %vm789_vm4, %v834_v40, 0 }
 0x2e6   : > { %2182 = vmatpush3.bf16.msra.mxu0 %v839_v41 }
 0x2e7   : > { %v2333_v42 = vpop.eup %2332  ;;  %2193 = vmatprep.subr.bf16.mxu0 %v2406_v3 }
 0x2e8   : > { %v772_v43 = vsel %vm664_vm3, %v2333_v42, 0.0  ;;  %v886_v46 = vpop.permute.xlu1 %885 }
 0x2e9   : > { %773 = vadd.xlane.f32.xlu0 %v772_v43  ;;  %v891_v53 = vsel %vm664_vm3, %v886_v46, 0 }
 0x2eb   : > { %v2335_v44 = vpop.eup %2334 }
 0x2ec   : > { %v775_v45 = vsel %vm664_vm3, %v2335_v44, 0.0 }
 0x2ed   : > { %776 = vadd.xlane.f32.xlu1 %v775_v45 }
 0x2fe   : > { %935 = vrot.lane.b32.xlu1 %v2580_v13, %s2410_s28  ;;  %s2850_s28 = scalar_lea.vmem %s2831_s5, %s2507_s27 }
 0x2ff   : > { %883 = vrot.lane.b32.xlu0 %v2577_v9, %s2411_s24 }
 0x302   : > { %933 = vrot.lane.b32.xlu1 %v2580_v13, %s2411_s24 }
 0x376   : > { %v774_v47 = vpop.xlane.xlu0 %773 }
 0x377   : > { %2336 = vrcp.f32 %v774_v47 }
 0x37a   : > { %v777_v48 = vpop.xlane.xlu1 %776  ;;  %v884_v58 = vpop.permute.xlu0 %883 }
 0x37b   : > { %2338 = vrcp.f32 %v777_v48 }
 0x37e   : > { %v936_v55 = vpop.permute.xlu1 %935 }
 0x37f   : > { %v941_v57 = vsel %vm664_vm3, %v936_v55, 0 }
 0x381   : > { %v2337_v49 = vpop.eup %2336 }
 0x382   : > { %v780_v50 = vmul.f32 %v2337_v49, %v2333_v42  ;;  %v934_v59 = vpop.permute.xlu1 %933 }
 0x384   : > { %v782_v51 = vpack.c.bf16 %v780_v50, %v780_v50 }
 0x385   : > { %v2339_v52 = vpop.eup %2338 }
 0x386   : > { %v781_v54 = vmul.f32 %v2339_v52, %v2335_v44  ;;  %2178 = vmatmul.mubr.msk.bf16.vlgmr.msra.gmra.mrb[4].mxu1 %vm664_vm3, %v782_v51 }
 0x387   : > { %2188 = vmatpush3.bf16.xpose.msra.mxu1 %v891_v53  ;;  %2189 = vmatprep.mubr.msk.bf16.mxu1 %vm2407_vm1, %v2406_v3 }
 0x388   : > { %v783_v56 = vpack.c.bf16 %v781_v54, %v781_v54  ;;  %2199 = vmatprep.subr.bf16.mxu1 %v2406_v3 }
 0x38a   : > { %2184 = vmatmul.mubr.msk.bf16.vlgmr.msra.gmra.mrb[8].mxu0 %vm664_vm3, %v783_v56 }
 0x38b   : > { %2194 = vmatpush3.bf16.xpose.msra.mxu0 %v941_v57  ;;  %2195 = vmatprep.mubr.msk.bf16.mxu0 %vm2407_vm1, %v2406_v3 }
 0x38c   : > { %2205 = vmatprep.subr.bf16.mxu0 %v2406_v3 }
 0x38e   : > { %2190 = vmatmul.mubr.msk.bf16.vlgmr.msra.gmra.mrb[8].mxu1 %vm664_vm3, %v884_v58 }
 0x38f   : > { %2201 = vmatprep.mubr.msk.bf16.mxu1 %vm2407_vm1, %v2406_v3 }
 0x392   : > { %2196 = vmatmul.mubr.msk.bf16.vlgmr.msra.gmra.mrb[12].mxu0 %vm664_vm3, %v934_v59 }
 0x393   : > { %2207 = vmatprep.mubr.msk.bf16.mxu0 %vm2407_vm1, %v2406_v3 }
 0x459   : > { %v827_v60 = vpop.f32.mrb[4].mxu1 }
 0x45a   : > { %881 = vst.msk [vmem:[#allocation2] sm:$0xff] %vm664_vm3, %v827_v60  ;;  %v2179_v61 = vpop.f32.mrb[5].mxu1 }
 0x45b   : > { %v830_v62 = vpop.f32.mrb[6].mxu1 }
 0x45c   : > { %v2180_v63 = vpop.f32.mrb[7].mxu1 }
 0x45d   : > { %v875_v0 = vpop.f32.mrb[8].mxu0 }
 0x45e   : > { %882 = vst.msk [vmem:[#allocation2 + $0x8] sm:$0xff] %vm664_vm3, %v875_v0  ;;  %v2185_v1 = vpop.f32.mrb[9].mxu0 }
 0x45f   : > { %v878_v2 = vpop.f32.mrb[10].mxu0 }
 0x460   : > { %v2186_v4 = vpop.f32.mrb[11].mxu0 }
 0x461   : > { %v927_v7 = vpop.f32.mrb[8].mxu1 }
 0x462   : > { %v928_v8 = vadd.f32 %v2598_v18, %v927_v7  ;;  %v2191_v10 = vpop.f32.mrb[9].mxu1 }
 0x463   : > { %v930_v11 = vpop.f32.mrb[10].mxu1 }
 0x464   : > { %v2192_v12 = vpop.f32.mrb[11].mxu1  ;;  %v983_v14 = vsel %vm664_vm3, %v928_v8, -inf }
 0x465   : > { %984 = vmax.xlane.f32.xlu1 %v983_v14  ;;  %v977_v15 = vpop.f32.mrb[12].mxu0 }
 0x466   : > { %v978_v16 = vadd.f32 %v2604_v23, %v977_v15  ;;  %v2197_v17 = vpop.f32.mrb[13].mxu0 }
 0x467   : > { %v980_v19 = vpop.f32.mrb[14].mxu0 }
 0x468   : > { %v2198_v20 = vpop.f32.mrb[15].mxu0  ;;  %v986_v21 = vsel %vm664_vm3, %v978_v16, -inf }
 0x469   : > { %987 = vmax.xlane.f32.xlu0 %v986_v21 }
 0x476   : > { %1007 = vrot.lane.b32.xlu1 %v2577_v9, %s2412_s29 }
 0x47a   : > { %1116 = vrot.lane.b32.xlu1 %v2577_v9, %s2413_s30 }
 0x47f   : > { %1055 = vrot.lane.b32.xlu0 %v2580_v13, %s2412_s29 }
 0x483   : > { %1114 = vrot.lane.b32.xlu0 %v2577_v9, %s2414_s3 }
 0x4f2   : > { %v985_v22 = vpop.xlane.xlu1 %984 }
 0x4f3   : > { %v989_v24 = vsub.f32 %v928_v8, %v985_v22 }
 0x4f5   : > { %v991_v25 = vmul.f32 1.442695, %v989_v24 }
 0x4f6   : > { %v1008_v26 = vpop.permute.xlu1 %1007  ;;  %v988_v27 = vpop.xlane.xlu0 %987 }
 0x4f7   : > { %2340 = vpow2.f32 %v991_v25  ;;  %v1013_v28 = vsel %vm789_vm4, %v1008_v26, 0  ;;  %v990_v29 = vsub.f32 %v978_v16, %v988_v27 }
 0x4f8   : > { %2200 = vmatpush3.bf16.msra.mxu1 %v1013_v28 }
 0x4f9   : > { %v993_v30 = vmul.f32 1.442695, %v990_v29  ;;  %2211 = vmatprep.subr.bf16.mxu1 %v2406_v3 }
 0x4fa   : > { %v1056_v31 = vpop.permute.xlu0 %1055  ;;  %v1117_v37 = vpop.permute.xlu1 %1116 }
 0x4fb   : > { %2342 = vpow2.f32 %v993_v30  ;;  %v1061_v32 = vsel %vm789_vm4, %v1056_v31, 0  ;;  %v1122_v44 = vsel %vm664_vm3, %v1117_v37, 0 }
 0x4fc   : > { %2206 = vmatpush3.bf16.msra.mxu0 %v1061_v32 }
 0x4fd   : > { %2217 = vmatprep.subr.bf16.mxu0 %v2406_v3 }
 0x4fe   : > { %v1115_v49 = vpop.permute.xlu0 %1114 }
 0x501   : > { %v2341_v33 = vpop.eup %2340 }
 0x502   : > { %v995_v34 = vsel %vm664_vm3, %v2341_v33, 0.0 }
 0x503   : > { %996 = vadd.xlane.f32.xlu1 %v995_v34 }
 0x505   : > { %v2343_v35 = vpop.eup %2342 }
 0x506   : > { %v998_v36 = vsel %vm664_vm3, %v2343_v35, 0.0 }
 0x507   : > { %999 = vadd.xlane.f32.xlu1 %v998_v36 }
 0x518   : > { %1166 = vrot.lane.b32.xlu1 %v2580_v13, %s2413_s30  ;;  %s2851_s30 = scalar_lea.vmem %s2832_s6, %s2507_s27 }
 0x51c   : > { %1164 = vrot.lane.b32.xlu1 %v2580_v13, %s2414_s3 }
 0x590   : > { %v997_v38 = vpop.xlane.xlu1 %996 }
 0x591   : > { %2344 = vrcp.f32 %v997_v38 }
 0x594   : > { %v1000_v39 = vpop.xlane.xlu1 %999 }
 0x595   : > { %2346 = vrcp.f32 %v1000_v39 }
 0x598   : > { %v1167_v46 = vpop.permute.xlu1 %1166 }
 0x599   : > { %v1172_v48 = vsel %vm664_vm3, %v1167_v46, 0 }
 0x59b   : > { %v2345_v40 = vpop.eup %2344 }
 0x59c   : > { %v1003_v41 = vmul.f32 %v2345_v40, %v2341_v33  ;;  %v1165_v50 = vpop.permute.xlu1 %1164 }
 0x59e   : > { %v1005_v42 = vpack.c.bf16 %v1003_v41, %v1003_v41 }
 0x59f   : > { %v2347_v43 = vpop.eup %2346 }
 0x5a0   : > { %v1004_v45 = vmul.f32 %v2347_v43, %v2343_v35  ;;  %2202 = vmatmul.mubr.msk.bf16.vlgmr.msra.gmra.mrb[12].mxu1 %vm664_vm3, %v1005_v42 }
 0x5a1   : > { %2212 = vmatpush3.bf16.xpose.msra.mxu1 %v1122_v44  ;;  %2213 = vmatprep.mubr.msk.bf16.mxu1 %vm2407_vm1, %v2406_v3 }
 0x5a2   : > { %v1006_v47 = vpack.c.bf16 %v1004_v45, %v1004_v45  ;;  %2223 = vmatprep.subr.bf16.mxu1 %v2406_v3 }
 0x5a4   : > { %2208 = vmatmul.mubr.msk.bf16.vlgmr.msra.gmra.mrb[16].mxu0 %vm664_vm3, %v1006_v47 }
 0x5a5   : > { %2218 = vmatpush3.bf16.xpose.msra.mxu0 %v1172_v48  ;;  %2219 = vmatprep.mubr.msk.bf16.mxu0 %vm2407_vm1, %v2406_v3 }
 0x5a6   : > { %2229 = vmatprep.subr.bf16.mxu0 %v2406_v3 }
 0x5a8   : > { %2214 = vmatmul.mubr.msk.bf16.vlgmr.msra.gmra.mrb[16].mxu1 %vm664_vm3, %v1115_v49 }
 0x5a9   : > { %2225 = vmatprep.mubr.msk.bf16.mxu1 %vm2407_vm1, %v2406_v3 }
 0x5ac   : > { %2220 = vmatmul.mubr.msk.bf16.vlgmr.msra.gmra.mrb[20].mxu0 %vm664_vm3, %v1165_v50 }
 0x5ad   : > { %2231 = vmatprep.mubr.msk.bf16.mxu0 %vm2407_vm1, %v2406_v3 }
 0x673   : > { %v2671_v51 = vpop.f32.mrb[12].mxu1 }
 0x674   : > { %v2203_v52 = vpop.f32.mrb[13].mxu1 }
 0x675   : > { %v1052_v53 = vpop.f32.mrb[14].mxu1 }
 0x676   : > { %v2204_v54 = vpop.f32.mrb[15].mxu1 }
 0x677   : > { %v2673_v55 = vpop.f32.mrb[16].mxu0 }
 0x678   : > { %v2209_v56 = vpop.f32.mrb[17].mxu0 }
 0x679   : > { %v1100_v57 = vpop.f32.mrb[18].mxu0 }
 0x67a   : > { %v2210_v58 = vpop.f32.mrb[19].mxu0 }
 0x67b   : > { %v1158_v59 = vpop.f32.mrb[16].mxu1 }
 0x67c   : > { %v1159_v60 = vadd.f32 %v2598_v18, %v1158_v59  ;;  %v2215_v61 = vpop.f32.mrb[17].mxu1 }
 0x67d   : > { %v1161_v62 = vpop.f32.mrb[18].mxu1 }
 0x67e   : > { %v2216_v63 = vpop.f32.mrb[19].mxu1  ;;  %v1214_v0 = vsel %vm664_vm3, %v1159_v60, -inf }
 0x67f   : > { %1215 = vmax.xlane.f32.xlu0 %v1214_v0  ;;  %v1208_v1 = vpop.f32.mrb[20].mxu0 }
 0x680   : > { %v1209_v2 = vadd.f32 %v2604_v23, %v1208_v1  ;;  %v2221_v4 = vpop.f32.mrb[21].mxu0 }
 0x681   : > { %v1211_v7 = vpop.f32.mrb[22].mxu0 }
 0x682   : > { %v2222_v8 = vpop.f32.mrb[23].mxu0  ;;  %v1217_v10 = vsel %vm664_vm3, %v1209_v2, -inf }
 0x683   : > { %1218 = vmax.xlane.f32.xlu1 %v1217_v10 }
 0x694   : > { %1238 = vrot.lane.b32.xlu1 %v2577_v9, %s2415_s15 }
 0x698   : > { %1347 = vrot.lane.b32.xlu1 %v2577_v9, %s2416_s4 }
 0x69c   : > { %1397 = vrot.lane.b32.xlu1 %v2580_v13, %s2416_s4 }
 0x6a0   : > { %1395 = vrot.lane.b32.xlu1 %v2580_v13, %s2417_s17 }
 0x70c   : > { %v1216_v11 = vpop.xlane.xlu0 %1215 }
 0x70d   : > { %v1220_v12 = vsub.f32 %v1159_v60, %v1216_v11 }
 0x70f   : > { %v1222_v14 = vmul.f32 1.442695, %v1220_v12 }
 0x710   : > { %v1219_v15 = vpop.xlane.xlu1 %1218 }
 0x711   : > { %2348 = vpow2.f32 %v1222_v14  ;;  %v1221_v16 = vsub.f32 %v1209_v2, %v1219_v15 }
 0x713   : > { %v1224_v17 = vmul.f32 1.442695, %v1221_v16 }
 0x714   : > { %v1239_v19 = vpop.permute.xlu1 %1238 }
 0x715   : > { %2350 = vpow2.f32 %v1224_v17  ;;  %v1244_v20 = vsel %vm789_vm4, %v1239_v19, 0 }
 0x716   : > { %2224 = vmatpush3.bf16.msra.mxu1 %v1244_v20 }
 0x717   : > { %2235 = vmatprep.subr.bf16.mxu1 %v2406_v3 }
 0x718   : > { %v1348_v31 = vpop.permute.xlu1 %1347 }
 0x719   : > { %v1353_v35 = vsel %vm664_vm3, %v1348_v31, 0 }
 0x71b   : > { %v2349_v21 = vpop.eup %2348 }
 0x71c   : > { %v1226_v22 = vsel %vm664_vm3, %v2349_v21, 0.0  ;;  %v1398_v37 = vpop.permute.xlu1 %1397 }
 0x71d   : > { %1227 = vadd.xlane.f32.xlu0 %v1226_v22  ;;  %v1403_v39 = vsel %vm664_vm3, %v1398_v37, 0 }
 0x71f   : > { %v2351_v24 = vpop.eup %2350 }
 0x720   : > { %v1229_v25 = vsel %vm664_vm3, %v2351_v24, 0.0  ;;  %v1396_v41 = vpop.permute.xlu1 %1395 }
 0x721   : > { %1230 = vadd.xlane.f32.xlu0 %v1229_v25 }
 0x737   : > { %1286 = vrot.lane.b32.xlu0 %v2580_v13, %s2415_s15 }
 0x73b   : > { %1345 = vrot.lane.b32.xlu0 %v2577_v9, %s2417_s17 }
 0x7aa   : > { %v1228_v26 = vpop.xlane.xlu0 %1227 }
 0x7ab   : > { %2352 = vrcp.f32 %v1228_v26 }
 0x7ae   : > { %v1231_v27 = vpop.xlane.xlu0 %1230 }
 0x7af   : > { %2354 = vrcp.f32 %v1231_v27  ;;  %v2324_v27 = vld [vmem:[%s2520_s20] sm:$0xff]  }
 0x7b2   : > { %v1287_v28 = vpop.permute.xlu0 %1286 }
 0x7b3   : > { %v1292_v29 = vsel %vm789_vm4, %v1287_v28, 0  ;;  %v2325_v28 = vld [vmem:[%s2520_s20 + $0x8] sm:$0xff]  }
 0x7b4   : > { %2230 = vmatpush3.bf16.msra.mxu0 %v1292_v29 }
 0x7b5   : > { %v2353_v30 = vpop.eup %2352  ;;  %2241 = vmatprep.subr.bf16.mxu0 %v2406_v3 }
 0x7b6   : > { %v1234_v32 = vmul.f32 %v2353_v30, %v2349_v21  ;;  %v1346_v40 = vpop.permute.xlu0 %1345 }
 0x7b8   : > { %v1236_v33 = vpack.c.bf16 %v1234_v32, %v1234_v32 }
 0x7b9   : > { %v2355_v34 = vpop.eup %2354 }
 0x7ba   : > { %v1235_v36 = vmul.f32 %v2355_v34, %v2351_v24  ;;  %2226 = vmatmul.mubr.msk.bf16.vlgmr.msra.gmra.mrb[20].mxu1 %vm664_vm3, %v1236_v33 }
 0x7bb   : > { %2236 = vmatpush3.bf16.xpose.msra.mxu1 %v1353_v35  ;;  %2237 = vmatprep.mubr.msk.bf16.mxu1 %vm2407_vm1, %v2406_v3 }
 0x7bc   : > { %v1237_v38 = vpack.c.bf16 %v1235_v36, %v1235_v36  ;;  %2247 = vmatprep.subr.bf16.mxu1 %v2406_v3 }
 0x7be   : > { %2232 = vmatmul.mubr.msk.bf16.vlgmr.msra.gmra.mrb[24].mxu0 %vm664_vm3, %v1237_v38 }
 0x7bf   : > { %2242 = vmatpush3.bf16.xpose.msra.mxu0 %v1403_v39  ;;  %2243 = vmatprep.mubr.msk.bf16.mxu0 %vm2407_vm1, %v2406_v3 }
 0x7c0   : > { %2253 = vmatprep.subr.bf16.mxu0 %v2406_v3 }
 0x7c2   : > { %2238 = vmatmul.mubr.msk.bf16.vlgmr.msra.gmra.mrb[24].mxu1 %vm664_vm3, %v1346_v40 }
 0x7c3   : > { %2249 = vmatprep.mubr.msk.bf16.mxu1 %vm2407_vm1, %v2406_v3 }
 0x7c6   : > { %2244 = vmatmul.mubr.msk.bf16.vlgmr.msra.gmra.mrb[28].mxu0 %vm664_vm3, %v1396_v41 }
 0x7c7   : > { %2255 = vmatprep.mubr.msk.bf16.mxu0 %vm2407_vm1, %v2406_v3 }
 0x88d   : > { %v1280_v42 = vpop.f32.mrb[20].mxu1 }
 0x88e   : > { %v2227_v43 = vpop.f32.mrb[21].mxu1 }
 0x88f   : > { %v1283_v44 = vpop.f32.mrb[22].mxu1  ;;  %v2327_v43 = vld [vmem:[%s2529_s13 + $0x8] sm:$0xff]  }
 0x890   : > { %v2228_v45 = vpop.f32.mrb[23].mxu1  ;;  %v2328_v44 = vld [vmem:[%s2539_s18] sm:$0xff]  }
 0x891   : > { %v1328_v46 = vpop.f32.mrb[24].mxu0  ;;  %v2329_v45 = vld [vmem:[%s2539_s18 + $0x8] sm:$0xff]  }
 0x892   : > { %v2233_v47 = vpop.f32.mrb[25].mxu0 }
 0x893   : > { %v1331_v48 = vpop.f32.mrb[26].mxu0 }
 0x894   : > { %v2234_v49 = vpop.f32.mrb[27].mxu0 }
 0x895   : > { %v1389_v50 = vpop.f32.mrb[24].mxu1 }
 0x896   : > { %v1390_v52 = vadd.f32 %v2598_v18, %v1389_v50  ;;  %v2239_v53 = vpop.f32.mrb[25].mxu1 }
 0x897   : > { %v1392_v54 = vpop.f32.mrb[26].mxu1 }
 0x898   : > { %v2240_v56 = vpop.f32.mrb[27].mxu1  ;;  %v1445_v57 = vsel %vm664_vm3, %v1390_v52, -inf }
 0x899   : > { %1446 = vmax.xlane.f32.xlu0 %v1445_v57  ;;  %v1439_v58 = vpop.f32.mrb[28].mxu0 }
 0x89a   : > { %v1440_v59 = vadd.f32 %v2604_v23, %v1439_v58  ;;  %v2245_v60 = vpop.f32.mrb[29].mxu0 }
 0x89b   : > { %v1442_v61 = vpop.f32.mrb[30].mxu0 }
 0x89c   : > { %v2246_v62 = vpop.f32.mrb[31].mxu0  ;;  %v1448_v63 = vsel %vm664_vm3, %v1440_v59, -inf }
 0x89d   : > { %1449 = vmax.xlane.f32.xlu1 %v1448_v63 }
 0x8ae   : > { %1469 = vrot.lane.b32.xlu1 %v2577_v9, %s2418_s23 }
 0x8b2   : > { %1105 = vrot.lane.b32.xlu1 %v2671_v51, %s2419_s16 }
 0x8b6   : > { %1107 = vrot.lane.b32.xlu1 %v2673_v55, %s2419_s16 }
 0x8ba   : > { %1338 = vrot.lane.b32.xlu1 %v1328_v46, %s2420_s19 }
 0x926   : > { %v1447_v18 = vpop.xlane.xlu0 %1446 }
 0x927   : > { %v1451_v23 = vsub.f32 %v1390_v52, %v1447_v18 }
 0x929   : > { %v1453_v0 = vmul.f32 1.442695, %v1451_v23 }
 0x92a   : > { %v1450_v1 = vpop.xlane.xlu1 %1449 }
 0x92b   : > { %2356 = vpow2.f32 %v1453_v0  ;;  %v1452_v2 = vsub.f32 %v1440_v59, %v1450_v1 }
 0x92d   : > { %v1455_v4 = vmul.f32 1.442695, %v1452_v2 }
 0x92e   : > { %v1470_v7 = vpop.permute.xlu1 %1469 }
 0x92f   : > { %2358 = vpow2.f32 %v1455_v4  ;;  %v1475_v9 = vsel %vm789_vm4, %v1470_v7, 0 }
 0x930   : > { %2248 = vmatpush3.bf16.msra.mxu1 %v1475_v9 }
 0x931   : > { %2259 = vmatprep.subr.bf16.mxu1 %v2406_v3 }
 0x932   : > { %v1106_v51 = vpop.permute.xlu1 %1105 }
 0x933   : > { %1112 = vst.msk [vmem:[#allocation2] sm:$0xff] %vm1111_vm5, %v1106_v51 }
 0x935   : > { %v2357_v55 = vpop.eup %2356 }
 0x936   : > { %v1108_v8 = vpop.permute.xlu1 %1107  ;;  %v1457_v10 = vsel %vm664_vm3, %v2357_v55, 0.0 }
 0x937   : > { %1113 = vst.msk [vmem:[#allocation2 + $0x8] sm:$0xff] %vm1111_vm5, %v1108_v8  ;;  %1458 = vadd.xlane.f32.xlu0 %v1457_v10 }
 0x939   : > { %v2359_v11 = vpop.eup %2358 }
 0x93a   : > { %v1339_v12 = vpop.permute.xlu1 %1338  ;;  %v1460_v14 = vsel %vm664_vm3, %v2359_v11, 0.0 }
 0x93b   : > { %1344 = vst.msk [vmem:[#allocation2 + $0x8] sm:$0xff] %vm1342_vm6, %v1339_v12  ;;  %1461 = vadd.xlane.f32.xlu0 %v1460_v14 }
 0x951   : > { %1517 = vrot.lane.b32.xlu0 %v2580_v13, %s2418_s23 }
 0x955   : > { %1336 = vrot.lane.b32.xlu0 %v1280_v42, %s2420_s19  ;;  %v2326_v42 = vld [vmem:[%s2529_s13] sm:$0xff]  }
 0x9c4   : > { %v1459_v15 = vpop.xlane.xlu0 %1458 }
 0x9c5   : > { %2360 = vrcp.f32 %v1459_v15 }
 0x9c8   : > { %v1462_v16 = vpop.xlane.xlu0 %1461 }
 0x9c9   : > { %2362 = vrcp.f32 %v1462_v16 }
 0x9cc   : > { %v1518_v17 = vpop.permute.xlu0 %1517 }
 0x9cd   : > { %v1523_v19 = vsel %vm789_vm4, %v1518_v17, 0  ;;  %v2087_v17 = vld [vmem:[%s2850_s28] ss:$0 sm:$0xff]  ;;  %s2423_s28 = smov [#allocation3]  }
 0x9ce   : > { %2254 = vmatpush3.bf16.msra.mxu0 %v1523_v19  ;;  %s1918_s24 = sshll.u32 %s2423_s28, 4  ;;  %s1919_s24 = int_to_ptr.vmem [resolvable:$true] %s1918_s24 }
 0x9cf   : > { %v2361_v20 = vpop.eup %2360  ;;  %2267 = vmatprep.subr.bf16.mxu0 %v2406_v3  ;;  %p2375_p9 = scmp.lt.s32.totalorder %s1919_s24, %s1919_s24 }
 0x9d0   : > { %v1465_v21 = vmul.f32 %v2361_v20, %v2357_v55  ;;  %v1337_v22 = vpop.permute.xlu0 %1336 }
 0x9d1   : > { %1343 = vst.msk [vmem:[#allocation2] sm:$0xff] %vm1342_vm6, %v1337_v22 }
 0x9d2   : > { %v1467_v24 = vpack.c.bf16 %v1465_v21, %v1465_v21  ;;  %v2088_v21 = vld [vmem:[%s2851_s30] ss:$0 sm:$0xff] }
 0x9d3   : > { %v2363_v13 = vpop.eup %2362 }
 0x9d4   : > { %v1466_v25 = vmul.f32 %v2363_v13, %v2359_v11  ;;  %2250 = vmatmul.mubr.msk.bf16.vlgmr.msra.gmra.mrb[28].mxu1 %vm664_vm3, %v1467_v24 }
 0x9d5   : > { %2263 = vmatprep.mubr.msk.bf16.mxu1 %vm2407_vm1, %v2406_v3  ;;  %2260 = vmatpush3.bf16.msra.mxu1 %v2324_v27  ;;  %v2330_v27 = vld [vmem:[%s2539_s18 + $0x10] sm:$0xff]  }
 0x9d6   : > { %v1468_v26 = vpack.c.bf16 %v1466_v25, %v1466_v25  ;;  %2261 = vmatprep.subr.bf16.mxu1 %v2406_v3 }
 0x9d8   : > { %2256 = vmatmul.mubr.msk.bf16.vlgmr.msra.gmra.mrb[32].mxu0 %vm664_vm3, %v1468_v26 }
 0x9d9   : > { %2271 = vmatprep.mubr.msk.bf16.mxu0 %vm2407_vm1, %v2406_v3  ;;  %2262 = vmatpush3.bf16.msra.mxu1 %v2325_v28  ;;  %v2331_v28 = vld [vmem:[%s2539_s18 + $0x18] sm:$0xff]  }
 0x9da   : > { %2275 = vmatprep.subr.bf16.mxu1 %v2406_v3  ;;  %2268 = vmatpush3.bf16.msra.mxu0 %v2326_v42 }
 0x9db   : > { %2269 = vmatprep.subr.bf16.mxu0 %v2406_v3 }
 0x9de   : > { %2270 = vmatpush3.bf16.msra.mxu0 %v2327_v43 }
 0xaa7   : > { %v1511_v29 = vpop.f32.mrb[28].mxu1 }
 0xaa8   : > { %1567 = vrot.lane.b32.xlu0 %v1511_v29, %s2421_s22  ;;  %v2251_v30 = vpop.f32.mrb[29].mxu1  ;;  %v1896_v29 = vld [vmem:[%s2828_s2] sm:$0xff] }
 0xaa9   : > { %v1514_v31 = vpop.f32.mrb[30].mxu1  ;;  %v1897_v30 = vld [vmem:[%s2828_s2 + $0x8] sm:$0xff] }
 0xaaa   : > { %v2252_v32 = vpop.f32.mrb[31].mxu1  ;;  %v2422_v31 = vmov 0  }
 0xaab   : > { %v1559_v33 = vpop.f32.mrb[32].mxu0  ;;  %2321 = vset.pattern.permute.xlu1 %v2422_v31  ;;  %2320 = vset.pattern.permute.xlu0 %v2422_v31 }
 0xaac   : > { %1569 = vrot.lane.b32.xlu1 %v1559_v33, %s2421_s22  ;;  %v2257_v34 = vpop.f32.mrb[33].mxu0  ;;  %1900 = vperm.xlu0 %2320, %v1896_v29  }
 0xaad   : > { %v1562_v35 = vpop.f32.mrb[34].mxu0 }
 0xaae   : > { %v2258_v36 = vpop.f32.mrb[35].mxu0 }
 0xab0   : > { %1905 = vperm.xlu1 %2321, %v1897_v30  }
 0xb1a   : > { %v1568_v37 = vpop.permute.xlu0 %1567 }
 0xb1b   : > { %1574 = vst.msk [vmem:[#allocation2] sm:$0xff] %vm1573_vm7, %v1568_v37 }
 0xb1e   : > { %v1570_v38 = vpop.permute.xlu1 %1569 }
 0xb1f   : > { %1575 = vst.msk [vmem:[#allocation2 + $0x8] sm:$0xff] %vm1573_vm7, %v1570_v38 }
 0xb22   : > { %v1576_v39 = vld [vmem:[#allocation2] sm:$0xff] }
 0xb26   : > { %v1577_v40 = vld [vmem:[#allocation2 + $0x8] sm:$0xff] }
 0xb27   : > { %v1578_v41 = vpack.c.bf16 %v1577_v40, %v1576_v39 }
 0xb29   : > { %2264 = vmatmul.mubr.msk.bf16.vlgmr.msra.gmra.mrb[32].mxu1 %vm600_vm2, %v1578_v41  ;;  %v2093_v41 = vld [vmem:[%s564_s21] ss:$0 sm:$0xff] }
 0xb2a   : > { %2283 = vmatprep.mubr.msk.bf16.mxu1 %vm2407_vm1, %v2406_v3  ;;  %2276 = vmatpush3.bf16.msra.mxu1 %v2328_v44 }
 0xb2b   : > { %2277 = vmatprep.subr.bf16.mxu1 %v2406_v3 }
 0xb2e   : > { %2278 = vmatpush3.bf16.msra.mxu1 %v2329_v45 }
 0xb2f   : > { %2279 = vmatprep.subr.bf16.mxu1 %v2406_v3 }
 0xb32   : > { %2280 = vmatpush3.bf16.msra.mxu1 %v2330_v27 }
 0xb33   : > { %2281 = vmatprep.subr.bf16.mxu1 %v2406_v3  ;;  %v2089_v3 = vld [vmem:[%s556_s14] ss:$0 sm:$0xff] }
 0xb36   : > { %2282 = vmatpush3.bf16.msra.mxu1 %v2331_v28 }
 0xbfc   : > { %v1632_v46 = vpop.f32.mrb[32].mxu1 }
 0xbfd   : > { %v1639_v47 = vadd.f32 %v1632_v46, %v2564_v5  ;;  %v2265_v48 = vpop.f32.mrb[33].mxu1 }
 0xbfe   : > { %v1635_v49 = vpop.f32.mrb[34].mxu1 }
 0xbff   : > { %v1653_v50 = vmul.f32 %v1639_v47, %v1639_v47  ;;  %v1640_v52 = vadd.f32 %v1635_v49, %v2566_v6  ;;  %v2266_v53 = vpop.f32.mrb[35].mxu1  ;;  %v1643_v54 = vsel %vm600_vm2, %v1639_v47, 0.0 }
 0xc01   : > { %v1644_v56 = vsel %vm600_vm2, %v1640_v52, 0.0  ;;  %v1654_v57 = vmul.f32 %v1640_v52, %v1640_v52  ;;  %v1655_v59 = vsel %vm600_vm2, %v1653_v50, 0.0 }
 0xc02   : > { %v1645_v58 = vadd.f32 %v1644_v56, %v1643_v54 }
 0xc03   : > { %v1656_v60 = vsel %vm600_vm2, %v1654_v57, 0.0 }
 0xc04   : > { %v1646_v61 = vrot.slane %v1645_v58, 4  ;;  %v1657_v62 = vadd.f32 %v1656_v60, %v1655_v59 }
 0xc06   : > { %v1647_v63 = vadd.f32 %v1646_v61, %v1645_v58  ;;  %v1658_v5 = vrot.slane %v1657_v62, 4 }
 0xc08   : > { %v1648_v18 = vrot.slane %v1647_v63, 2  ;;  %v1659_v23 = vadd.f32 %v1658_v5, %v1657_v62 }
 0xc0a   : > { %v1649_v0 = vadd.f32 %v1648_v18, %v1647_v63  ;;  %v1660_v1 = vrot.slane %v1659_v23, 2 }
 0xc0c   : > { %v1650_v6 = vrot.slane %v1649_v0, 1  ;;  %v1661_v2 = vadd.f32 %v1660_v1, %v1659_v23 }
 0xc0e   : > { %v1651_v4 = vadd.f32 %v1650_v6, %v1649_v0  ;;  %v1662_v7 = vrot.slane %v1661_v2, 1 }
 0xc10   : > { %v1652_v9 = vmul.f32 0.0625, %v1651_v4  ;;  %v1663_v51 = vadd.f32 %v1662_v7, %v1661_v2 }
 0xc12   : > { %v1664_v55 = vmul.f32 0.0625, %v1663_v51  ;;  %v1665_v8 = vmul.f32 %v1652_v9, %v1652_v9  ;;  %v1668_v10 = vsub.f32 %v1639_v47, %v1652_v9  ;;  %v1669_v11 = vsub.f32 %v1640_v52, %v1652_v9 }
 0xc14   : > { %v1666_v12 = vsub.f32 %v1664_v55, %v1665_v8 }
 0xc16   : > { %v1667_v14 = vmax.f32 %v1666_v12, 0.0 }
 0xc18   : > { %v1670_v15 = vadd.f32 1e-05, %v1667_v14 }
 0xc1a   : > { %2364 = vrsqrt.f32 %v1670_v15  ;;  %v2099_v15 = vld [vmem:[%s567_s25] ss:$0 sm:$0xff]  ;;  %s2368_s25 = scalar_lea.vmem %s1919_s24, 256 }
 0xc1b   : > { %p2369_p6 = scmp.ne.s32.totalorder %s1919_s24, %s2368_s25  ;;  %p2376_p10 = scmp.lt.s32.totalorder %s2368_s25, %s2368_s25 }
 0xc1d   : > { %p2370_p7 = pnand %p2369_p6, %p2291_p5  ;;  %p2377_p11 = por %p2376_p10, %p2375_p9 }
 0xc1f   : > { %p2371_p8 = pneg %p2370_p7 }
 0xc21   : > { %p2378_p12 = pnand %p2377_p11, %p2371_p8 }
 0xc24   : > { %v2365_v16 = vpop.eup %2364 }
 0xc25   : > { %v1672_v19 = vmul.f32 %v2365_v16, %v1668_v10  ;;  %v1673_v20 = vmul.f32 %v2365_v16, %v1669_v11 }
 0xc27   : > { %v1680_v22 = vmul.f32 %v2087_v17, %v1672_v19  ;;  %v1681_v24 = vmul.f32 %v2087_v17, %v1673_v20  ;;  %v2100_v19 = vld [vmem:[%s570_s7] ss:$0 sm:$0xff] }
 0xc29   : > { %v1688_v13 = vadd.f32 %v2088_v21, %v1680_v22  ;;  %v1689_v25 = vadd.f32 %v2088_v21, %v1681_v24  ;;  %v1901_v22 = vpop.permute.xlu0 %1900  ;;  %v1906_v24 = vpop.permute.xlu1 %1905 }
 0xc2b   : > { %v1690_v26 = vpack.c.bf16 %v1689_v25, %v1688_v13 }
 0xc2d   : > { %2272 = vmatmul.mubr.msk.bf16.vlgmr.msra.gmra.mrb[36].mxu0 %vm600_vm2, %v1690_v26 }
 0xd00   : > { %v1751_v32 = vpop.f32.mrb[36].mxu0 }
 0xd01   : > { %v1752_v33 = vadd.f32 %v2089_v3, %v1751_v32  ;;  %v2273_v34 = vpop.f32.mrb[37].mxu0 }
 0xd02   : > { %v1754_v35 = vpop.f32.mrb[38].mxu0 }
 0xd03   : > { %v1755_v36 = vadd.f32 %v2089_v3, %v1754_v35  ;;  %v2274_v37 = vpop.f32.mrb[39].mxu0  ;;  %v1758_v38 = vmax.f32 %v1752_v33, 0.0 }
 0xd05   : > { %v1759_v39 = vmax.f32 %v1755_v36, 0.0 }
 0xd07   : > { %v1760_v40 = vpack.c.bf16 %v1759_v39, %v1758_v38 }
 0xd09   : > { %2284 = vmatmul.mubr.msk.bf16.vlgmr.msra.gmra.mrb[36].mxu1 %vm1800_vm8, %v1760_v40 }
 0xddc   : > { %v1838_v42 = vpop.f32.mrb[36].mxu1 }
 0xddd   : > { %v1839_v43 = vadd.f32 %v2093_v41, %v1838_v42  ;;  %v2285_v44 = vpop.f32.mrb[37].mxu1 }
 0xdde   : > { %v1841_v45 = vpop.f32.mrb[38].mxu1 }
 0xddf   : > { %v1845_v46 = vadd.f32 %v1839_v43, %v1688_v13  ;;  %v1842_v47 = vadd.f32 %v2093_v41, %v1841_v45  ;;  %v2286_v48 = vpop.f32.mrb[39].mxu1 }
 0xde1   : > { %v1859_v49 = vmul.f32 %v1845_v46, %v1845_v46  ;;  %v1846_v50 = vadd.f32 %v1842_v47, %v1689_v25  ;;  %v1849_v52 = vsel %vm600_vm2, %v1845_v46, 0.0 }
 0xde3   : > { %v1850_v53 = vsel %vm600_vm2, %v1846_v50, 0.0  ;;  %v1860_v54 = vmul.f32 %v1846_v50, %v1846_v50  ;;  %v1861_v57 = vsel %vm600_vm2, %v1859_v49, 0.0 }
 0xde4   : > { %v1851_v56 = vadd.f32 %v1850_v53, %v1849_v52 }
 0xde5   : > { %v1862_v58 = vsel %vm600_vm2, %v1860_v54, 0.0 }
 0xde6   : > { %v1852_v59 = vrot.slane %v1851_v56, 4  ;;  %v1863_v60 = vadd.f32 %v1862_v58, %v1861_v57 }
 0xde8   : > { %v1853_v61 = vadd.f32 %v1852_v59, %v1851_v56  ;;  %v1864_v62 = vrot.slane %v1863_v60, 4 }
 0xdea   : > { %v1854_v63 = vrot.slane %v1853_v61, 2  ;;  %v1865_v5 = vadd.f32 %v1864_v62, %v1863_v60 }
 0xdec   : > { %v1855_v18 = vadd.f32 %v1854_v63, %v1853_v61  ;;  %v1866_v23 = vrot.slane %v1865_v5, 2 }
 0xdee   : > { %v1856_v0 = vrot.slane %v1855_v18, 1  ;;  %v1867_v1 = vadd.f32 %v1866_v23, %v1865_v5 }
 0xdf0   : > { %v1857_v6 = vadd.f32 %v1856_v0, %v1855_v18  ;;  %v1868_v2 = vrot.slane %v1867_v1, 1 }
 0xdf2   : > { %v1858_v4 = vmul.f32 0.0625, %v1857_v6  ;;  %v1869_v7 = vadd.f32 %v1868_v2, %v1867_v1 }
 0xdf4   : > { %v1870_v9 = vmul.f32 0.0625, %v1869_v7  ;;  %v1871_v51 = vmul.f32 %v1858_v4, %v1858_v4  ;;  %v1875_v55 = vsub.f32 %v1846_v50, %v1858_v4  ;;  %v1874_v8 = vsub.f32 %v1845_v46, %v1858_v4 }
 0xdf6   : > { %v1872_v10 = vsub.f32 %v1870_v9, %v1871_v51 }
 0xdf8   : > { %v1873_v11 = vmax.f32 %v1872_v10, 0.0 }
 0xdfa   : > { %v1876_v12 = vadd.f32 1e-05, %v1873_v11 }
 0xdfc   : > { %2366 = vrsqrt.f32 %v1876_v12 }
 0xe06   : > { %v2367_v14 = vpop.eup %2366 }
 0xe07   : > { %v1878_v16 = vmul.f32 %v2367_v14, %v1874_v8  ;;  %v1879_v17 = vmul.f32 %v2367_v14, %v1875_v55 }
 0xe09   : > { %v1886_v20 = vmul.f32 %v2099_v15, %v1878_v16  ;;  %v1887_v21 = vmul.f32 %v2099_v15, %v1879_v17 }
 0xe0b   : > { %v1894_v13 = vadd.f32 %v2100_v19, %v1886_v20  ;;  %v1895_v25 = vadd.f32 %v2100_v19, %v1887_v21 }
 0xe0d   : > { %v1908_v26 = vmul.f32 %v1901_v22, %v1894_v13  ;;  %v1909_v27 = vmul.f32 %v1906_v24, %v1895_v25 }
 0xe0f   : > { %1910 = vst.msk [vmem:[#allocation3] sm:$0xff] %vm600_vm2, %v1908_v26  ;;  %1911 = vst.msk [vmem:[#allocation3 + $0x8] sm:$0xff] %vm600_vm2, %v1909_v27 }
 0xe10   : > { %2381 = shalt.err (!%p2378_p12)
}
 0xe11   : > { %s2852_s29 = sld [smem:[#allocation10_spill]] }
 0xe17   : > { %s2382_s30 = scalar_lea.hbm %s2852_s29, 256 }
 0xe18   : > { %p2383_p13 = scmp.ne.s32.totalorder %s2852_s29, %s2382_s30  ;;  %p2388_p2 = scmp.lt.u32.totalorder %s2382_s30, %s2852_s29 }
 0xe1a   : > { %p2384_p0 = pnand %p2383_p13, %p2291_p5 }
 0xe1c   : > { %p2385_p1 = pneg %p2384_p0 }
 0xe1e   : > { %p2390_p3 = pnand %p2388_p2, %p2385_p1 }
 0xe20   : > { %2393 = shalt.err (!%p2390_p3)
}
 0xe21   : > { %s2424_s23 = smov 128  }
 0xe22   : > { %2288 = dma.vmem_to_hbm [thread:$0]  (%p2291_p5), %s1919_s24, 256, %s2852_s29, [#allocation4], %s2424_s23, %s2424_s23, %s2419_s16  }
 0xe23   : > { %2399 = dma.done.wait (%p2291_p5), [#allocation4], 256  }
 0xe24   : > { %2401 = vsyncadd (%p2291_p5), [#allocation4], 4294967040 }
 0xe25 PF: > { %s2853_s22 = sld [smem:[#allocation6_spill]] }
 0xe2b   : > { %s24_s25 = sadd.s32 1, %s2853_s22  }
 0xe2c   : > { %p21_p4 = scmp.ge.s32.totalorder %s24_s25, 4  }
 0xe2e   :  { %23 = sbr.rel (!%p21_p4) target bundleno = 6 (0x6), region = 130 }
 0xe35   :  { %1934 = vsyncpa [#allocation4], 1 }
 0xe36   :  { %1936 = vsyncpa [#allocation4 + $0x1], 1 }

</bundles_post_ra>
